<compile_context>
chip_gen: v5e
topology: v5e:2x2
jax: 0.10.0
libtpu: 0.0.40
codegen_flags: <defaults>
</compile_context>

<pallas_src>
from functools import partial

import jax
import jax.numpy as jnp
import numpy as np
from jax import lax
from jax.experimental import pallas as pl
from jax.experimental.pallas import tpu as pltpu


def _tgcn2_kernel(dstc_ref, dstr_ref, srcr_ref, invc_ref, xT_ref, efT_ref,
                  wx_ref, we_ref, b1_ref, w1b_ref, b1b_ref,
                  w2a_ref, b2a_ref, w2b_ref, b2b_ref,
                  wgn_ref, bgn_ref, wge_ref, bge_ref,
                  hnT_ref, heT_ref, pxT_scr, aggT_scr, *, hid):
    H = hid
    f32 = jnp.float32
    cdt = wx_ref.dtype                       # MXU compute dtype (bf16 or f32)
    N = xT_ref.shape[-1]
    TE = dstr_ref.shape[-1]
    k = pl.program_id(1)

    # ---- per-batch init (first edge tile): project nodes once, zero accum ----
    @pl.when(k == 0)
    def _():
        xT = xT_ref[0]                                                   # [Cin, N]
        pxT_scr[...] = jnp.dot(wx_ref[...], xT,
                               preferred_element_type=f32).astype(cdt)   # [4H, N]
        aggT_scr[...] = jnp.zeros_like(aggT_scr)

    # ---- index-driven one-hot blocks for THIS edge tile only ----------------
    dst_col = dstc_ref[...]                                              # [TE, 1] int32
    dst_row = dstr_ref[...]                                              # [1, TE] int32
    src_row = srcr_ref[...]                                              # [1, TE] int32
    iota_nt = lax.broadcasted_iota(jnp.int32, (N, TE), 0)
    gi_T = (iota_nt == dst_row).astype(cdt)          # [N, TE] gather x_i (targets)
    gj_T = (iota_nt == src_row).astype(cdt)          # [N, TE] gather x_j (sources)
    sc_oh = (dst_col == lax.broadcasted_iota(jnp.int32, (TE, N), 1)).astype(cdt)
                                                     # [TE, N] scatter onto targets

    # ---- TripletGCN nn1 layer 1 (gates z|h packed on the sublane axis) ------
    pxT = pxT_scr[...]                               # [4H, N]
    pxiT = pxT[:2 * H]                               # [2H, N] x_i projections
    pxjT = pxT[2 * H:]                               # [2H, N] x_j projections
    efT = efT_ref[0]                                 # [Cin, TE]
    pe = jnp.dot(we_ref[...], efT, preferred_element_type=f32)           # [2H, TE]
    h1 = (jnp.dot(pxiT, gi_T, preferred_element_type=f32)
          + jnp.dot(pxjT, gj_T, preferred_element_type=f32)
          + pe + b1_ref[...])
    h1 = jnp.maximum(h1, 0.0).astype(cdt)                                # [2H, TE]

    # ---- nn1 layer 2: (msg_i+msg_j | new_edge) for (z | h) in one push ------
    m = jnp.dot(w1b_ref[...], h1, preferred_element_type=f32) + b1b_ref[...]  # [4H, TE]
    msgT = m[:2 * H]                                 # [2H, TE] node messages
    edgeT = m[2 * H:]                                # [2H, TE] new edge features

    # ---- segment-sum of messages onto target nodes (mean applied later) -----
    aggT_scr[...] += jnp.dot(msgT.astype(cdt), sc_oh,
                             preferred_element_type=f32)                 # [2H, N]

    # ---- edge epilogue for this tile (GRU gate, H_prev == 0) ----------------
    pre_e = jnp.dot(wge_ref[...], edgeT.astype(cdt),
                    preferred_element_type=f32) + bge_ref[...]           # [2H, TE]
    z_e = jax.nn.sigmoid(pre_e[:H])
    ht_e = jnp.tanh(pre_e[H:])
    heT_ref[0] = ((1.0 - z_e) * ht_e).astype(heT_ref.dtype)              # [H, TE]

    # ---- node finalize after the last edge tile ------------------------------
    @pl.when(k == pl.num_programs(1) - 1)
    def _():
        agg = aggT_scr[...] * invc_ref[...]          # f32 mean scaling (exact 1/deg)
        h2 = jnp.maximum(jnp.dot(w2a_ref[...], agg.astype(cdt),
                                 preferred_element_type=f32) + b2a_ref[...], 0.0)
        node = jnp.dot(w2b_ref[...], h2.astype(cdt),
                       preferred_element_type=f32) + b2b_ref[...]        # [2H, N]
        pre_n = jnp.dot(wgn_ref[...], node.astype(cdt),
                        preferred_element_type=f32) + bgn_ref[...]       # [2H, N]
        z_n = jax.nn.sigmoid(pre_n[:H])
        ht_n = jnp.tanh(pre_n[H:])
        hnT_ref[0] = ((1.0 - z_n) * ht_n).astype(hnT_ref.dtype)          # [H, N]


def _blkdiag(a, b):
    p, q = a.shape
    r, s = b.shape
    top = jnp.concatenate([a, jnp.zeros((p, s), a.dtype)], axis=1)
    bot = jnp.concatenate([jnp.zeros((r, q), a.dtype), b], axis=1)
    return jnp.concatenate([top, bot], axis=0)


def _pack_params_T(params, cin, hid, cdt):
    """Gate-fused (z|h), hidden-rows-dropped, TRANSPOSED weight packing."""
    H = hid
    z, h = 0, 2
    w1a, b1a = params["w1a"], params["b1a"]
    w1b, b1b = params["w1b"], params["b1b"]
    w2a, b2a = params["w2a"], params["b2a"]
    w2b, b2b = params["w2b"], params["b2b"]
    wgn, bgn = params["wgn"], params["bgn"]
    wge, bge = params["wge"], params["bge"]

    def cat_g(w, sl):
        return jnp.concatenate([w[z][sl], w[h][sl]], axis=-1)

    # nn1 layer 1: x_i / edge / x_j row blocks, gates packed on output columns.
    wx = jnp.concatenate([cat_g(w1a, slice(0, cin)),
                          cat_g(w1a, slice(2 * cin, 3 * cin))], axis=-1)   # [Cin, 4H]
    we = cat_g(w1a, slice(cin, 2 * cin))                                    # [Cin, 2H]
    b1 = jnp.concatenate([b1a[z], b1a[h]], axis=-1)                         # [1, 2H]

    # nn1 layer 2: fold msg_i + msg_j; keep new_edge; block-diag over gates.
    wmsg_z = w1b[z][:, :H] + w1b[z][:, 2 * H:]
    wmsg_h = w1b[h][:, :H] + w1b[h][:, 2 * H:]
    wedg_z = w1b[z][:, H:2 * H]
    wedg_h = w1b[h][:, H:2 * H]
    w1bp = jnp.concatenate([_blkdiag(wmsg_z, wmsg_h),
                            _blkdiag(wedg_z, wedg_h)], axis=1)              # [2H, 4H]
    bmsg = jnp.concatenate([b1b[z][:, :H] + b1b[z][:, 2 * H:],
                            b1b[h][:, :H] + b1b[h][:, 2 * H:]], axis=-1)
    bedg = jnp.concatenate([b1b[z][:, H:2 * H], b1b[h][:, H:2 * H]], axis=-1)
    b1bp = jnp.concatenate([bmsg, bedg], axis=-1)                           # [1, 4H]

    w2ap = _blkdiag(w2a[z], w2a[h]); b2ap = jnp.concatenate([b2a[z], b2a[h]], -1)
    w2bp = _blkdiag(w2b[z], w2b[h]); b2bp = jnp.concatenate([b2b[z], b2b[h]], -1)
    # Gate linears: only the `val` rows (:H) survive (hidden rows multiply 0).
    wgnp = _blkdiag(wgn[z][:H], wgn[h][:H]); bgnp = jnp.concatenate([bgn[z], bgn[h]], -1)
    wgep = _blkdiag(wge[z][:H], wge[h][:H]); bgep = jnp.concatenate([bge[z], bge[h]], -1)

    Wt = lambda w: jnp.asarray(w.T, cdt)               # transposed, MXU dtype
    Bt = lambda b: jnp.asarray(b.T, jnp.float32)       # column biases, f32

    return (Wt(wx), Wt(we), Bt(b1), Wt(w1bp), Bt(b1bp),
            Wt(w2ap), Bt(b2ap), Wt(w2bp), Bt(b2bp),
            Wt(wgnp), Bt(bgnp), Wt(wgep), Bt(bgep))


def _graph_arrays(edge_index, num_nodes):
    src = edge_index[0].astype(jnp.int32)
    dst = edge_index[1].astype(jnp.int32)
    E = src.shape[0]
    dst_col = dst.reshape(E, 1)
    dst_row = dst.reshape(1, E)
    src_row = src.reshape(1, E)
    counts = jnp.zeros((num_nodes,), jnp.float32).at[dst].add(1.0)
    inv_cnt = (1.0 / jnp.maximum(counts, 1.0)).reshape(1, num_nodes)
    return dst_col, dst_row, src_row, inv_cnt


def _choose_edge_tile(E, max_tile=512):
    if E <= max_tile or E % 128 != 0:
        return E
    te = max_tile - (max_tile % 128)
    while te >= 128:
        if E % te == 0:
            return te
        te -= 128
    return E


def tgcn2_forward(X, edge_index, edge_feature, params, *,
                  compute_dtype=jnp.bfloat16, edge_tile=None):
    B, N, Cin = X.shape
    E = edge_feature.shape[1]
    H = params["w2b"].shape[-1]
    TE = edge_tile if edge_tile is not None else _choose_edge_tile(E)
    if TE != E:
        assert E % TE == 0 and TE % 128 == 0, "edge tile must divide E and be a multiple of 128"
    n_et = E // TE

    dst_col, dst_row, src_row, inv_cnt = _graph_arrays(edge_index, N)
    packed = _pack_params_T(params, Cin, H, compute_dtype)

    # Transposed, MXU-dtype activations (layout plumbing in the wrapper).
    XT = jnp.asarray(jnp.transpose(X, (0, 2, 1)), compute_dtype)             # [B, Cin, N]
    efT = jnp.asarray(jnp.transpose(edge_feature, (0, 2, 1)), compute_dtype)  # [B, Cin, E]

    kernel = partial(_tgcn2_kernel, hid=H)

    def const_spec(a):
        shp = a.shape
        return pl.BlockSpec(shp, lambda b, k: (0,) * len(shp))

    in_specs = [
        pl.BlockSpec((TE, 1), lambda b, k: (k, 0)),          # dst (column layout)
        pl.BlockSpec((1, TE), lambda b, k: (0, k)),          # dst (row layout)
        pl.BlockSpec((1, TE), lambda b, k: (0, k)),          # src (row layout)
        const_spec(inv_cnt),                                 # 1/deg  [1, N]
        pl.BlockSpec((1, Cin, N), lambda b, k: (b, 0, 0)),   # X^T
        pl.BlockSpec((1, Cin, TE), lambda b, k: (b, 0, k)),  # edge_feature^T
    ] + [const_spec(p) for p in packed]                       # tiny resident weights

    out_specs = [
        pl.BlockSpec((1, H, N), lambda b, k: (b, 0, 0)),     # H_node^T (written at last k)
        pl.BlockSpec((1, H, TE), lambda b, k: (b, 0, k)),    # H_edge^T (per edge tile)
    ]
    out_shape = [
        jax.ShapeDtypeStruct((B, H, N), jnp.float32),
        jax.ShapeDtypeStruct((B, H, E), jnp.float32),
    ]

    # Scheduler hint (approximate).
    H2, H4 = 2 * H, 4 * H
    flops = int(B) * 2 * (
        Cin * N * H4 + Cin * E * H2 + 2 * N * E * H2 + H2 * E * H4
        + E * N * H2 + H2 * E * H2 + 3 * H2 * N * H2)
    transcend = int(B) * 4 * H * (N + E)
    bytes_accessed = int(
        XT.size * XT.dtype.itemsize + efT.size * efT.dtype.itemsize
        + 3 * E * 4 + N * 4
        + sum(int(p.size) * p.dtype.itemsize for p in packed)
        + B * H * (N + E) * 4)

    fn = pl.pallas_call(
        kernel,
        out_shape=out_shape,
        grid_spec=pltpu.PrefetchScalarGridSpec(
            num_scalar_prefetch=0,
            grid=(B, n_et),
            in_specs=in_specs,
            out_specs=out_specs,
            scratch_shapes=[pltpu.VMEM((4 * H, N), compute_dtype),   # projected nodes
                            pltpu.VMEM((2 * H, N), jnp.float32)]),   # message accumulator
        compiler_params=pltpu.CompilerParams(
            dimension_semantics=("parallel", "arbitrary"),
            vmem_limit_bytes=32 * 1024 * 1024),
        cost_estimate=pl.CostEstimate(flops=flops, transcendentals=transcend,
                                      bytes_accessed=bytes_accessed),
    )
    hnT, heT = fn(dst_col, dst_row, src_row, inv_cnt, XT, efT, *packed)
    return jnp.transpose(hnT, (0, 2, 1)), jnp.transpose(heT, (0, 2, 1))


def tgcn2_reference(X, edge_index, edge_feature, params):
    """Pure-JAX reference mirroring the PyTorch TGCN2 forward, including the
    (dead) reset-gate path, to validate the kernel's dead-code elimination."""
    B, N, _ = X.shape
    E = edge_feature.shape[1]
    H = params["w2b"].shape[-1]
    src, dst = edge_index[0], edge_index[1]
    gi = jax.nn.one_hot(dst, N, dtype=jnp.float32)
    gj = jax.nn.one_hot(src, N, dtype=jnp.float32)
    counts = jnp.maximum(jnp.sum(gi, axis=0), 1.0)
    sm = gi.T / counts[:, None]

    def conv(g):
        xi = jnp.einsum("en,bnc->bec", gi, X)
        xj = jnp.einsum("en,bnc->bec", gj, X)
        t = jnp.concatenate([xi, edge_feature, xj], axis=-1)
        h1 = jax.nn.relu(t @ params["w1a"][g] + params["b1a"][g])
        m = h1 @ params["w1b"][g] + params["b1b"][g]
        m_i, new_e, m_j = m[..., :H], m[..., H:2 * H], m[..., 2 * H:]
        agg = jnp.einsum("ne,beh->bnh", sm, m_i + m_j)
        h2 = jax.nn.relu(agg @ params["w2a"][g] + params["b2a"][g])
        return h2 @ params["w2b"][g] + params["b2b"][g], new_e

    hz_n = jnp.zeros((B, N, H), jnp.float32)
    hz_e = jnp.zeros((B, E, H), jnp.float32)
    gz_n, gz_e = conv(0)
    gr_n, gr_e = conv(1)
    gh_n, gh_e = conv(2)

    def lin(g, v, h, w, b):
        return jnp.concatenate([v, h], axis=-1) @ w[g] + b[g]

    Z_n = jax.nn.sigmoid(lin(0, gz_n, hz_n, params["wgn"], params["bgn"]))
    Z_e = jax.nn.sigmoid(lin(0, gz_e, hz_e, params["wge"], params["bge"]))
    R_n = jax.nn.sigmoid(lin(1, gr_n, hz_n, params["wgn"], params["bgn"]))
    R_e = jax.nn.sigmoid(lin(1, gr_e, hz_e, params["wge"], params["bge"]))
    Ht_n = jnp.tanh(lin(2, gh_n, hz_n * R_n, params["wgn"], params["bgn"]))
    Ht_e = jnp.tanh(lin(2, gh_e, hz_e * R_e, params["wge"], params["bge"]))
    return Z_n * hz_n + (1 - Z_n) * Ht_n, Z_e * hz_e + (1 - Z_e) * Ht_e


if __name__ == "__main__":
    # in_channels=8, out_channels=16, batch=2; graph with 64 nodes, 256 edges
    # (edge tile = 128 so the segment-sum accumulation path is exercised).
    B, N, E, Cin, H = 2, 64, 256, 8, 16

    key = jax.random.PRNGKey(0)
    keys = jax.random.split(key, 20)

    X = jax.random.normal(keys[0], (B, N, Cin), jnp.float32)
    edge_feature = jax.random.normal(keys[1], (B, E, Cin), jnp.float32)
    src = jax.random.randint(keys[2], (E,), 0, N)
    dst = jax.random.randint(keys[3], (E,), 0, N)
    edge_index = jnp.stack([src, dst]).astype(jnp.int32)

    def w(k, shape):
        return jax.random.normal(k, shape, jnp.float32) * 0.2

    # Weights stacked over the 3 gates (z, r, h) along the leading axis.
    params = {
        "w1a": w(keys[4], (3, 3 * Cin, H)),  "b1a": w(keys[5], (3, 1, H)),
        "w1b": w(keys[6], (3, H, 3 * H)),    "b1b": w(keys[7], (3, 1, 3 * H)),
        "w2a": w(keys[8], (3, H, H)),        "b2a": w(keys[9], (3, 1, H)),
        "w2b": w(keys[10], (3, H, H)),       "b2b": w(keys[11], (3, 1, H)),
        "wgn": w(keys[12], (3, 2 * H, H)),   "bgn": w(keys[13], (3, 1, H)),
        "wge": w(keys[14], (3, 2 * H, H)),   "bge": w(keys[15], (3, 1, H)),
    }

    # f32 compute path (tight numerical check of the restructured algebra).
    hn32, he32 = tgcn2_forward(X, edge_index, edge_feature, params,
                               compute_dtype=jnp.float32, edge_tile=128)
    # bf16 MXU path (primary / fast path).
    hn16, he16 = tgcn2_forward(X, edge_index, edge_feature, params,
                               compute_dtype=jnp.bfloat16, edge_tile=128)
    (hn32, he32, hn16, he16) = jax.block_until_ready((hn32, he32, hn16, he16))

    rn, re = tgcn2_reference(X, edge_index, edge_feature, params)
    rn, re = np.asarray(rn), np.asarray(re)

    assert np.allclose(np.asarray(hn32), rn, atol=1e-3, rtol=1e-3)
    assert np.allclose(np.asarray(he32), re, atol=1e-3, rtol=1e-3)
    assert np.allclose(np.asarray(hn16), rn, atol=2e-2, rtol=2e-2)
    assert np.allclose(np.asarray(he16), re, atol=2e-2, rtol=2e-2)
    print("KERNEL_OK")
</pallas_src>

<mosaic_0001>
module attributes {stable_mosaic.version = 11 : i64} {
  func.func @_tgcn2_kernel(%arg0: i32, %arg1: i32, %arg2: memref<128x1xi32, #tpu.memory_space<vmem>>, %arg3: memref<1x128xi32, #tpu.memory_space<vmem>>, %arg4: memref<1x128xi32, #tpu.memory_space<vmem>>, %arg5: memref<1x64xf32, #tpu.memory_space<vmem>>, %arg6: memref<1x8x64xf32, #tpu.memory_space<vmem>>, %arg7: memref<1x8x128xf32, #tpu.memory_space<vmem>>, %arg8: memref<64x8xf32, #tpu.memory_space<vmem>>, %arg9: memref<32x8xf32, #tpu.memory_space<vmem>>, %arg10: memref<32x1xf32, #tpu.memory_space<vmem>>, %arg11: memref<64x32xf32, #tpu.memory_space<vmem>>, %arg12: memref<64x1xf32, #tpu.memory_space<vmem>>, %arg13: memref<32x32xf32, #tpu.memory_space<vmem>>, %arg14: memref<32x1xf32, #tpu.memory_space<vmem>>, %arg15: memref<32x32xf32, #tpu.memory_space<vmem>>, %arg16: memref<32x1xf32, #tpu.memory_space<vmem>>, %arg17: memref<32x32xf32, #tpu.memory_space<vmem>>, %arg18: memref<32x1xf32, #tpu.memory_space<vmem>>, %arg19: memref<32x32xf32, #tpu.memory_space<vmem>>, %arg20: memref<32x1xf32, #tpu.memory_space<vmem>>, %arg21: memref<1x16x64xf32, #tpu.memory_space<vmem>>, %arg22: memref<1x16x128xf32, #tpu.memory_space<vmem>>, %arg23: memref<64x64xf32, #tpu.memory_space<vmem>>, %arg24: memref<32x64xf32, #tpu.memory_space<vmem>>) attributes {dimension_semantics = [#tpu.dimension_semantics<parallel>, #tpu.dimension_semantics<arbitrary>], iteration_bounds = array<i64: 2, 2>, scalar_prefetch = 0 : i64, scratch_operands = 2 : i64, tpu.core_type = #tpu.core_type<tc>, window_params = [{transform_indices = @transform_0, window_bounds = array<i64: 128, 1>}, {transform_indices = @transform_1, window_bounds = array<i64: 1, 128>}, {transform_indices = @transform_2, window_bounds = array<i64: 1, 128>}, {pipeline_mode = #tpu.pipeline_mode<synchronous>, transform_indices = @transform_3, window_bounds = array<i64: 1, 64>}, {transform_indices = @transform_4, window_bounds = array<i64: 1, 8, 64>}, {transform_indices = @transform_5, window_bounds = array<i64: 1, 8, 128>}, {pipeline_mode = #tpu.pipeline_mode<synchronous>, transform_indices = @transform_6, window_bounds = array<i64: 64, 8>}, {pipeline_mode = #tpu.pipeline_mode<synchronous>, transform_indices = @transform_7, window_bounds = array<i64: 32, 8>}, {pipeline_mode = #tpu.pipeline_mode<synchronous>, transform_indices = @transform_8, window_bounds = array<i64: 32, 1>}, {pipeline_mode = #tpu.pipeline_mode<synchronous>, transform_indices = @transform_9, window_bounds = array<i64: 64, 32>}, {pipeline_mode = #tpu.pipeline_mode<synchronous>, transform_indices = @transform_10, window_bounds = array<i64: 64, 1>}, {pipeline_mode = #tpu.pipeline_mode<synchronous>, transform_indices = @transform_11, window_bounds = array<i64: 32, 32>}, {pipeline_mode = #tpu.pipeline_mode<synchronous>, transform_indices = @transform_12, window_bounds = array<i64: 32, 1>}, {pipeline_mode = #tpu.pipeline_mode<synchronous>, transform_indices = @transform_13, window_bounds = array<i64: 32, 32>}, {pipeline_mode = #tpu.pipeline_mode<synchronous>, transform_indices = @transform_14, window_bounds = array<i64: 32, 1>}, {pipeline_mode = #tpu.pipeline_mode<synchronous>, transform_indices = @transform_15, window_bounds = array<i64: 32, 32>}, {pipeline_mode = #tpu.pipeline_mode<synchronous>, transform_indices = @transform_16, window_bounds = array<i64: 32, 1>}, {pipeline_mode = #tpu.pipeline_mode<synchronous>, transform_indices = @transform_17, window_bounds = array<i64: 32, 32>}, {pipeline_mode = #tpu.pipeline_mode<synchronous>, transform_indices = @transform_18, window_bounds = array<i64: 32, 1>}, {transform_indices = @transform_19, window_bounds = array<i64: 1, 16, 64>}, {transform_indices = @transform_20, window_bounds = array<i64: 1, 16, 128>}]} {
    %c0_i32 = arith.constant 0 : i32
    %0 = arith.cmpi eq, %arg1, %c0_i32 : i32
    %1 = arith.extui %0 : i1 to i32
    %c0_i32_0 = arith.constant 0 : i32
    %2 = arith.cmpi ne, %1, %c0_i32_0 : i32
    scf.if %2 {
      %c0_39 = arith.constant 0 : index
      %c0_40 = arith.constant 0 : index
      %c0_41 = arith.constant 0 : index
      %69 = vector.load %arg6[%c0_39, %c0_40, %c0_41] : memref<1x8x64xf32, #tpu.memory_space<vmem>>, vector<1x8x64xf32>
      %70 = vector.shape_cast %69 : vector<1x8x64xf32> to vector<8x64xf32>
      %c0_42 = arith.constant 0 : index
      %c0_43 = arith.constant 0 : index
      %71 = vector.load %arg8[%c0_42, %c0_43] : memref<64x8xf32, #tpu.memory_space<vmem>>, vector<64x8xf32>
      %cst_44 = arith.constant dense<0.000000e+00> : vector<64x64xf32>
      %72 = tpu.matmul %71, %70, %cst_44 {dimension_numbers = #tpu.dot_dimension_numbers<[1], [0], [0], [1], [0, 0, 1, 1], [], []>} : vector<64x8xf32>, vector<8x64xf32>, vector<64x64xf32> -> vector<64x64xf32>
      %c0_45 = arith.constant 0 : index
      %c0_46 = arith.constant 0 : index
      %73 = vector.load %arg23[%c0_45, %c0_46] : memref<64x64xf32, #tpu.memory_space<vmem>>, vector<64x64xf32>
      tpu.vector_store %arg23[%c0_45, %c0_46], %72 {strides = array<i32>} : memref<64x64xf32, #tpu.memory_space<vmem>>, vector<64x64xf32>,
      %cst_47 = arith.constant 0.000000e+00 : f32
      %74 = vector.broadcast %cst_47 : f32 to vector<32x64xf32>
      %c0_48 = arith.constant 0 : index
      %c0_49 = arith.constant 0 : index
      %75 = vector.load %arg24[%c0_48, %c0_49] : memref<32x64xf32, #tpu.memory_space<vmem>>, vector<32x64xf32>
      tpu.vector_store %arg24[%c0_48, %c0_49], %74 {strides = array<i32>} : memref<32x64xf32, #tpu.memory_space<vmem>>, vector<32x64xf32>,
    } else {
    }
    %c0 = arith.constant 0 : index
    %c0_1 = arith.constant 0 : index
    %3 = vector.load %arg2[%c0, %c0_1] : memref<128x1xi32, #tpu.memory_space<vmem>>, vector<128x1xi32>
    %c0_2 = arith.constant 0 : index
    %c0_3 = arith.constant 0 : index
    %4 = vector.load %arg3[%c0_2, %c0_3] : memref<1x128xi32, #tpu.memory_space<vmem>>, vector<1x128xi32>
    %c0_4 = arith.constant 0 : index
    %c0_5 = arith.constant 0 : index
    %5 = vector.load %arg4[%c0_4, %c0_5] : memref<1x128xi32, #tpu.memory_space<vmem>>, vector<1x128xi32>
    %6 = tpu.iota {dimensions = array<i32: 0>} : vector<64x128xi32>
    %7 = vector.broadcast %4 : vector<1x128xi32> to vector<64x128xi32>
    %8 = arith.cmpi eq, %6, %7 : vector<64x128xi32>
    %9 = arith.extui %8 : vector<64x128xi1> to vector<64x128xi32>
    %10 = arith.sitofp %9 : vector<64x128xi32> to vector<64x128xf32>
    %11 = vector.broadcast %5 : vector<1x128xi32> to vector<64x128xi32>
    %12 = arith.cmpi eq, %6, %11 : vector<64x128xi32>
    %13 = arith.extui %12 : vector<64x128xi1> to vector<64x128xi32>
    %14 = arith.sitofp %13 : vector<64x128xi32> to vector<64x128xf32>
    %15 = tpu.iota {dimensions = array<i32: 1>} : vector<128x64xi32>
    %16 = vector.broadcast %3 : vector<128x1xi32> to vector<128x64xi32>
    %17 = arith.cmpi eq, %16, %15 : vector<128x64xi32>
    %18 = arith.extui %17 : vector<128x64xi1> to vector<128x64xi32>
    %19 = arith.sitofp %18 : vector<128x64xi32> to vector<128x64xf32>
    %c0_6 = arith.constant 0 : index
    %c0_7 = arith.constant 0 : index
    %20 = vector.load %arg23[%c0_6, %c0_7] : memref<64x64xf32, #tpu.memory_space<vmem>>, vector<64x64xf32>
    %21 = vector.extract_strided_slice %20 {offsets = [0, 0], sizes = [32, 64], strides = [1, 1]} : vector<64x64xf32> to vector<32x64xf32>
    %22 = vector.extract_strided_slice %20 {offsets = [32, 0], sizes = [32, 64], strides = [1, 1]} : vector<64x64xf32> to vector<32x64xf32>
    %c0_8 = arith.constant 0 : index
    %c0_9 = arith.constant 0 : index
    %c0_10 = arith.constant 0 : index
    %23 = vector.load %arg7[%c0_8, %c0_9, %c0_10] : memref<1x8x128xf32, #tpu.memory_space<vmem>>, vector<1x8x128xf32>
    %24 = vector.shape_cast %23 : vector<1x8x128xf32> to vector<8x128xf32>
    %c0_11 = arith.constant 0 : index
    %c0_12 = arith.constant 0 : index
    %25 = vector.load %arg9[%c0_11, %c0_12] : memref<32x8xf32, #tpu.memory_space<vmem>>, vector<32x8xf32>
    %cst = arith.constant dense<0.000000e+00> : vector<32x128xf32>
    %26 = tpu.matmul %25, %24, %cst {dimension_numbers = #tpu.dot_dimension_numbers<[1], [0], [0], [1], [0, 0, 1, 1], [], []>} : vector<32x8xf32>, vector<8x128xf32>, vector<32x128xf32> -> vector<32x128xf32>
    %cst_13 = arith.constant dense<0.000000e+00> : vector<32x128xf32>
    %27 = tpu.matmul %21, %10, %cst_13 {dimension_numbers = #tpu.dot_dimension_numbers<[1], [0], [0], [1], [0, 0, 1, 1], [], []>} : vector<32x64xf32>, vector<64x128xf32>, vector<32x128xf32> -> vector<32x128xf32>
    %cst_14 = arith.constant dense<0.000000e+00> : vector<32x128xf32>
    %28 = tpu.matmul %22, %14, %cst_14 {dimension_numbers = #tpu.dot_dimension_numbers<[1], [0], [0], [1], [0, 0, 1, 1], [], []>} : vector<32x64xf32>, vector<64x128xf32>, vector<32x128xf32> -> vector<32x128xf32>
    %29 = arith.addf %27, %28 : vector<32x128xf32>
    %30 = arith.addf %29, %26 : vector<32x128xf32>
    %c0_15 = arith.constant 0 : index
    %c0_16 = arith.constant 0 : index
    %31 = vector.load %arg10[%c0_15, %c0_16] : memref<32x1xf32, #tpu.memory_space<vmem>>, vector<32x1xf32>
    %32 = vector.broadcast %31 : vector<32x1xf32> to vector<32x128xf32>
    %33 = arith.addf %30, %32 : vector<32x128xf32>
    %cst_17 = arith.constant 0.000000e+00 : f32
    %34 = vector.broadcast %cst_17 : f32 to vector<32x128xf32>
    %35 = arith.maximumf %33, %34 : vector<32x128xf32>
    %c0_18 = arith.constant 0 : index
    %c0_19 = arith.constant 0 : index
    %36 = vector.load %arg11[%c0_18, %c0_19] : memref<64x32xf32, #tpu.memory_space<vmem>>, vector<64x32xf32>
    %cst_20 = arith.constant dense<0.000000e+00> : vector<64x128xf32>
    %37 = tpu.matmul %36, %35, %cst_20 {dimension_numbers = #tpu.dot_dimension_numbers<[1], [0], [0], [1], [0, 0, 1, 1], [], []>} : vector<64x32xf32>, vector<32x128xf32>, vector<64x128xf32> -> vector<64x128xf32>
    %c0_21 = arith.constant 0 : index
    %c0_22 = arith.constant 0 : index
    %38 = vector.load %arg12[%c0_21, %c0_22] : memref<64x1xf32, #tpu.memory_space<vmem>>, vector<64x1xf32>
    %39 = vector.broadcast %38 : vector<64x1xf32> to vector<64x128xf32>
    %40 = arith.addf %37, %39 : vector<64x128xf32>
    %41 = vector.extract_strided_slice %40 {offsets = [0, 0], sizes = [32, 128], strides = [1, 1]} : vector<64x128xf32> to vector<32x128xf32>
    %42 = vector.extract_strided_slice %40 {offsets = [32, 0], sizes = [32, 128], strides = [1, 1]} : vector<64x128xf32> to vector<32x128xf32>
    %c0_23 = arith.constant 0 : index
    %c0_24 = arith.constant 0 : index
    %43 = vector.load %arg24[%c0_23, %c0_24] : memref<32x64xf32, #tpu.memory_space<vmem>>, vector<32x64xf32>
    %cst_25 = arith.constant dense<0.000000e+00> : vector<32x64xf32>
    %44 = tpu.matmul %41, %19, %cst_25 {dimension_numbers = #tpu.dot_dimension_numbers<[1], [0], [0], [1], [0, 0, 1, 1], [], []>} : vector<32x128xf32>, vector<128x64xf32>, vector<32x64xf32> -> vector<32x64xf32>
    %45 = arith.addf %43, %44 : vector<32x64xf32>
    %c0_26 = arith.constant 0 : index
    %c0_27 = arith.constant 0 : index
    %46 = vector.load %arg24[%c0_26, %c0_27] : memref<32x64xf32, #tpu.memory_space<vmem>>, vector<32x64xf32>
    tpu.vector_store %arg24[%c0_26, %c0_27], %45 {strides = array<i32>} : memref<32x64xf32, #tpu.memory_space<vmem>>, vector<32x64xf32>,
    %c0_28 = arith.constant 0 : index
    %c0_29 = arith.constant 0 : index
    %47 = vector.load %arg19[%c0_28, %c0_29] : memref<32x32xf32, #tpu.memory_space<vmem>>, vector<32x32xf32>
    %cst_30 = arith.constant dense<0.000000e+00> : vector<32x128xf32>
    %48 = tpu.matmul %47, %42, %cst_30 {dimension_numbers = #tpu.dot_dimension_numbers<[1], [0], [0], [1], [0, 0, 1, 1], [], []>} : vector<32x32xf32>, vector<32x128xf32>, vector<32x128xf32> -> vector<32x128xf32>
    %c0_31 = arith.constant 0 : index
    %c0_32 = arith.constant 0 : index
    %49 = vector.load %arg20[%c0_31, %c0_32] : memref<32x1xf32, #tpu.memory_space<vmem>>, vector<32x1xf32>
    %50 = vector.broadcast %49 : vector<32x1xf32> to vector<32x128xf32>
    %51 = arith.addf %48, %50 : vector<32x128xf32>
    %52 = vector.extract_strided_slice %51 {offsets = [0, 0], sizes = [16, 128], strides = [1, 1]} : vector<32x128xf32> to vector<16x128xf32>
    %53 = arith.negf %52 : vector<16x128xf32>
    %54 = math.exp %53 : vector<16x128xf32>
    %cst_33 = arith.constant 1.000000e+00 : f32
    %55 = vector.broadcast %cst_33 : f32 to vector<16x128xf32>
    %56 = arith.addf %55, %54 : vector<16x128xf32>
    %57 = arith.divf %55, %56 : vector<16x128xf32>
    %58 = vector.extract_strided_slice %51 {offsets = [16, 0], sizes = [16, 128], strides = [1, 1]} : vector<32x128xf32> to vector<16x128xf32>
    %59 = math.tanh %58 : vector<16x128xf32>
    %cst_34 = arith.constant 1.000000e+00 : f32
    %60 = vector.broadcast %cst_34 : f32 to vector<16x128xf32>
    %61 = arith.subf %60, %57 : vector<16x128xf32>
    %62 = arith.mulf %61, %59 : vector<16x128xf32>
    %c0_35 = arith.constant 0 : index
    %c0_36 = arith.constant 0 : index
    %c0_37 = arith.constant 0 : index
    %63 = vector.load %arg22[%c0_35, %c0_36, %c0_37] : memref<1x16x128xf32, #tpu.memory_space<vmem>>, vector<1x16x128xf32>
    %64 = vector.shape_cast %63 : vector<1x16x128xf32> to vector<16x128xf32>
    %65 = vector.shape_cast %62 : vector<16x128xf32> to vector<1x16x128xf32>
    tpu.vector_store %arg22[%c0_35, %c0_36, %c0_37], %65 {strides = array<i32>} : memref<1x16x128xf32, #tpu.memory_space<vmem>>, vector<1x16x128xf32>,
    %c1_i32 = arith.constant 1 : i32
    %66 = arith.cmpi eq, %arg1, %c1_i32 : i32
    %67 = arith.extui %66 : i1 to i32
    %c0_i32_38 = arith.constant 0 : i32
    %68 = arith.cmpi ne, %67, %c0_i32_38 : i32
    scf.if %68 {
      %c0_39 = arith.constant 0 : index
      %c0_40 = arith.constant 0 : index
      %69 = vector.load %arg24[%c0_39, %c0_40] : memref<32x64xf32, #tpu.memory_space<vmem>>, vector<32x64xf32>
      %c0_41 = arith.constant 0 : index
      %c0_42 = arith.constant 0 : index
      %70 = vector.load %arg5[%c0_41, %c0_42] : memref<1x64xf32, #tpu.memory_space<vmem>>, vector<1x64xf32>
      %71 = vector.broadcast %70 : vector<1x64xf32> to vector<32x64xf32>
      %72 = arith.mulf %69, %71 : vector<32x64xf32>
      %c0_43 = arith.constant 0 : index
      %c0_44 = arith.constant 0 : index
      %73 = vector.load %arg13[%c0_43, %c0_44] : memref<32x32xf32, #tpu.memory_space<vmem>>, vector<32x32xf32>
      %cst_45 = arith.constant dense<0.000000e+00> : vector<32x64xf32>
      %74 = tpu.matmul %73, %72, %cst_45 {dimension_numbers = #tpu.dot_dimension_numbers<[1], [0], [0], [1], [0, 0, 1, 1], [], []>} : vector<32x32xf32>, vector<32x64xf32>, vector<32x64xf32> -> vector<32x64xf32>
      %c0_46 = arith.constant 0 : index
      %c0_47 = arith.constant 0 : index
      %75 = vector.load %arg14[%c0_46, %c0_47] : memref<32x1xf32, #tpu.memory_space<vmem>>, vector<32x1xf32>
      %76 = vector.broadcast %75 : vector<32x1xf32> to vector<32x64xf32>
      %77 = arith.addf %74, %76 : vector<32x64xf32>
      %cst_48 = arith.constant 0.000000e+00 : f32
      %78 = vector.broadcast %cst_48 : f32 to vector<32x64xf32>
      %79 = arith.maximumf %77, %78 : vector<32x64xf32>
      %c0_49 = arith.constant 0 : index
      %c0_50 = arith.constant 0 : index
      %80 = vector.load %arg15[%c0_49, %c0_50] : memref<32x32xf32, #tpu.memory_space<vmem>>, vector<32x32xf32>
      %cst_51 = arith.constant dense<0.000000e+00> : vector<32x64xf32>
      %81 = tpu.matmul %80, %79, %cst_51 {dimension_numbers = #tpu.dot_dimension_numbers<[1], [0], [0], [1], [0, 0, 1, 1], [], []>} : vector<32x32xf32>, vector<32x64xf32>, vector<32x64xf32> -> vector<32x64xf32>
      %c0_52 = arith.constant 0 : index
      %c0_53 = arith.constant 0 : index
      %82 = vector.load %arg16[%c0_52, %c0_53] : memref<32x1xf32, #tpu.memory_space<vmem>>, vector<32x1xf32>
      %83 = vector.broadcast %82 : vector<32x1xf32> to vector<32x64xf32>
      %84 = arith.addf %81, %83 : vector<32x64xf32>
      %c0_54 = arith.constant 0 : index
      %c0_55 = arith.constant 0 : index
      %85 = vector.load %arg17[%c0_54, %c0_55] : memref<32x32xf32, #tpu.memory_space<vmem>>, vector<32x32xf32>
      %cst_56 = arith.constant dense<0.000000e+00> : vector<32x64xf32>
      %86 = tpu.matmul %85, %84, %cst_56 {dimension_numbers = #tpu.dot_dimension_numbers<[1], [0], [0], [1], [0, 0, 1, 1], [], []>} : vector<32x32xf32>, vector<32x64xf32>, vector<32x64xf32> -> vector<32x64xf32>
      %c0_57 = arith.constant 0 : index
      %c0_58 = arith.constant 0 : index
      %87 = vector.load %arg18[%c0_57, %c0_58] : memref<32x1xf32, #tpu.memory_space<vmem>>, vector<32x1xf32>
      %88 = vector.broadcast %87 : vector<32x1xf32> to vector<32x64xf32>
      %89 = arith.addf %86, %88 : vector<32x64xf32>
      %90 = vector.extract_strided_slice %89 {offsets = [0, 0], sizes = [16, 64], strides = [1, 1]} : vector<32x64xf32> to vector<16x64xf32>
      %91 = arith.negf %90 : vector<16x64xf32>
      %92 = math.exp %91 : vector<16x64xf32>
      %cst_59 = arith.constant 1.000000e+00 : f32
      %93 = vector.broadcast %cst_59 : f32 to vector<16x64xf32>
      %94 = arith.addf %93, %92 : vector<16x64xf32>
      %95 = arith.divf %93, %94 : vector<16x64xf32>
      %96 = vector.extract_strided_slice %89 {offsets = [16, 0], sizes = [16, 64], strides = [1, 1]} : vector<32x64xf32> to vector<16x64xf32>
      %97 = math.tanh %96 : vector<16x64xf32>
      %cst_60 = arith.constant 1.000000e+00 : f32
      %98 = vector.broadcast %cst_60 : f32 to vector<16x64xf32>
      %99 = arith.subf %98, %95 : vector<16x64xf32>
      %100 = arith.mulf %99, %97 : vector<16x64xf32>
      %c0_61 = arith.constant 0 : index
      %c0_62 = arith.constant 0 : index
      %c0_63 = arith.constant 0 : index
      %101 = vector.load %arg21[%c0_61, %c0_62, %c0_63] : memref<1x16x64xf32, #tpu.memory_space<vmem>>, vector<1x16x64xf32>
      %102 = vector.shape_cast %101 : vector<1x16x64xf32> to vector<16x64xf32>
      %103 = vector.shape_cast %100 : vector<16x64xf32> to vector<1x16x64xf32>
      tpu.vector_store %arg21[%c0_61, %c0_62, %c0_63], %103 {strides = array<i32>} : memref<1x16x64xf32, #tpu.memory_space<vmem>>, vector<1x16x64xf32>,
    } else {
    }
    return
  }
  func.func @transform_0(%arg0: i32, %arg1: i32) -> (i32, i32) {
    %c0_i32 = arith.constant 0 : i32
    %c0_i32_0 = arith.constant 0 : i32
    return %arg1, %c0_i32 : i32, i32
  }
  func.func @transform_1(%arg0: i32, %arg1: i32) -> (i32, i32) {
    %c0_i32 = arith.constant 0 : i32
    %c0_i32_0 = arith.constant 0 : i32
    return %c0_i32, %arg1 : i32, i32
  }
  func.func @transform_2(%arg0: i32, %arg1: i32) -> (i32, i32) {
    %c0_i32 = arith.constant 0 : i32
    %c0_i32_0 = arith.constant 0 : i32
    return %c0_i32, %arg1 : i32, i32
  }
  func.func @transform_3(%arg0: i32, %arg1: i32) -> (i32, i32) {
    %c0_i32 = arith.constant 0 : i32
    %c0_i32_0 = arith.constant 0 : i32
    %c0_i32_1 = arith.constant 0 : i32
    return %c0_i32, %c0_i32_0 : i32, i32
  }
  func.func @transform_4(%arg0: i32, %arg1: i32) -> (i32, i32, i32) {
    %c0_i32 = arith.constant 0 : i32
    %c0_i32_0 = arith.constant 0 : i32
    %c0_i32_1 = arith.constant 0 : i32
    return %arg0, %c0_i32, %c0_i32_0 : i32, i32, i32
  }
  func.func @transform_5(%arg0: i32, %arg1: i32) -> (i32, i32, i32) {
    %c0_i32 = arith.constant 0 : i32
    %c0_i32_0 = arith.constant 0 : i32
    return %arg0, %c0_i32, %arg1 : i32, i32, i32
  }
  func.func @transform_6(%arg0: i32, %arg1: i32) -> (i32, i32) {
    %c0_i32 = arith.constant 0 : i32
    %c0_i32_0 = arith.constant 0 : i32
    %c0_i32_1 = arith.constant 0 : i32
    return %c0_i32, %c0_i32_0 : i32, i32
  }
  func.func @transform_7(%arg0: i32, %arg1: i32) -> (i32, i32) {
    %c0_i32 = arith.constant 0 : i32
    %c0_i32_0 = arith.constant 0 : i32
    %c0_i32_1 = arith.constant 0 : i32
    return %c0_i32, %c0_i32_0 : i32, i32
  }
  func.func @transform_8(%arg0: i32, %arg1: i32) -> (i32, i32) {
    %c0_i32 = arith.constant 0 : i32
    %c0_i32_0 = arith.constant 0 : i32
    %c0_i32_1 = arith.constant 0 : i32
    return %c0_i32, %c0_i32_0 : i32, i32
  }
  func.func @transform_9(%arg0: i32, %arg1: i32) -> (i32, i32) {
    %c0_i32 = arith.constant 0 : i32
    %c0_i32_0 = arith.constant 0 : i32
    %c0_i32_1 = arith.constant 0 : i32
    return %c0_i32, %c0_i32_0 : i32, i32
  }
  func.func @transform_10(%arg0: i32, %arg1: i32) -> (i32, i32) {
    %c0_i32 = arith.constant 0 : i32
    %c0_i32_0 = arith.constant 0 : i32
    %c0_i32_1 = arith.constant 0 : i32
    return %c0_i32, %c0_i32_0 : i32, i32
  }
  func.func @transform_11(%arg0: i32, %arg1: i32) -> (i32, i32) {
    %c0_i32 = arith.constant 0 : i32
    %c0_i32_0 = arith.constant 0 : i32
    %c0_i32_1 = arith.constant 0 : i32
    return %c0_i32, %c0_i32_0 : i32, i32
  }
  func.func @transform_12(%arg0: i32, %arg1: i32) -> (i32, i32) {
    %c0_i32 = arith.constant 0 : i32
    %c0_i32_0 = arith.constant 0 : i32
    %c0_i32_1 = arith.constant 0 : i32
    return %c0_i32, %c0_i32_0 : i32, i32
  }
  func.func @transform_13(%arg0: i32, %arg1: i32) -> (i32, i32) {
    %c0_i32 = arith.constant 0 : i32
    %c0_i32_0 = arith.constant 0 : i32
    %c0_i32_1 = arith.constant 0 : i32
    return %c0_i32, %c0_i32_0 : i32, i32
  }
  func.func @transform_14(%arg0: i32, %arg1: i32) -> (i32, i32) {
    %c0_i32 = arith.constant 0 : i32
    %c0_i32_0 = arith.constant 0 : i32
    %c0_i32_1 = arith.constant 0 : i32
    return %c0_i32, %c0_i32_0 : i32, i32
  }
  func.func @transform_15(%arg0: i32, %arg1: i32) -> (i32, i32) {
    %c0_i32 = arith.constant 0 : i32
    %c0_i32_0 = arith.constant 0 : i32
    %c0_i32_1 = arith.constant 0 : i32
    return %c0_i32, %c0_i32_0 : i32, i32
  }
  func.func @transform_16(%arg0: i32, %arg1: i32) -> (i32, i32) {
    %c0_i32 = arith.constant 0 : i32
    %c0_i32_0 = arith.constant 0 : i32
    %c0_i32_1 = arith.constant 0 : i32
    return %c0_i32, %c0_i32_0 : i32, i32
  }
  func.func @transform_17(%arg0: i32, %arg1: i32) -> (i32, i32) {
    %c0_i32 = arith.constant 0 : i32
    %c0_i32_0 = arith.constant 0 : i32
    %c0_i32_1 = arith.constant 0 : i32
    return %c0_i32, %c0_i32_0 : i32, i32
  }
  func.func @transform_18(%arg0: i32, %arg1: i32) -> (i32, i32) {
    %c0_i32 = arith.constant 0 : i32
    %c0_i32_0 = arith.constant 0 : i32
    %c0_i32_1 = arith.constant 0 : i32
    return %c0_i32, %c0_i32_0 : i32, i32
  }
  func.func @transform_19(%arg0: i32, %arg1: i32) -> (i32, i32, i32) {
    %c0_i32 = arith.constant 0 : i32
    %c0_i32_0 = arith.constant 0 : i32
    %c0_i32_1 = arith.constant 0 : i32
    return %arg0, %c0_i32, %c0_i32_0 : i32, i32, i32
  }
  func.func @transform_20(%arg0: i32, %arg1: i32) -> (i32, i32, i32) {
    %c0_i32 = arith.constant 0 : i32
    %c0_i32_0 = arith.constant 0 : i32
    return %arg0, %c0_i32, %arg1 : i32, i32, i32
  }
}

</mosaic_0001>

<bundles_post_ra>
// kernel: tpu_custom_call.1
= control target key start
LH: loop header
LB: loop body
LE: loop exit
PB: predicated region body
PF: predicated region fallthrough
CT: control target
= control target key end

     0   :  { %s3142_s0 = inlined_call_operand.vmem [shape: s32[256,1], index: 0, kind: input, shape index: {}]   ;;  %s3143_s1 = inlined_call_operand.vmem [shape: s32[1,256], index: 1, kind: input, shape index: {}]   ;;  %s3144_s2 = inlined_call_operand.vmem [shape: s32[1,256], index: 2, kind: input, shape index: {}]   ;;  %s3145_s3 = inlined_call_operand.vmem [shape: f32[1,64], index: 3, kind: input, shape index: {}]   ;;  %s3146_s4 = inlined_call_operand.vmem [shape: f32[2,8,64], index: 4, kind: input, shape index: {}]   ;;  %s3147_s5 = inlined_call_operand.vmem [shape: f32[2,8,256], index: 5, kind: input, shape index: {}]   ;;  %s3148_s6 = inlined_call_operand.vmem [shape: f32[64,8], index: 6, kind: input, shape index: {}]   ;;  %s3149_s7 = inlined_call_operand.vmem [shape: f32[32,8], index: 7, kind: input, shape index: {}]   ;;  %s3150_s8 = inlined_call_operand.vmem [shape: f32[32,1], index: 8, kind: input, shape index: {}]   ;;  %s3151_s9 = inlined_call_operand.vmem [shape: f32[64,32], index: 9, kind: input, shape index: {}]   ;;  %s3152_s10 = inlined_call_operand.vmem [shape: f32[64,1], index: 10, kind: input, shape index: {}]   ;;  %s3153_s11 = inlined_call_operand.vmem [shape: f32[32,32], index: 11, kind: input, shape index: {}]   ;;  %s3154_s12 = inlined_call_operand.vmem [shape: f32[32,1], index: 12, kind: input, shape index: {}]   ;;  %s3155_s13 = inlined_call_operand.vmem [shape: f32[32,32], index: 13, kind: input, shape index: {}]   ;;  %s3156_s14 = inlined_call_operand.vmem [shape: f32[32,1], index: 14, kind: input, shape index: {}]   ;;  %s3157_s15 = inlined_call_operand.vmem [shape: f32[32,32], index: 15, kind: input, shape index: {}]   ;;  %s3158_s16 = inlined_call_operand.vmem [shape: f32[32,1], index: 16, kind: input, shape index: {}]   ;;  %s3159_s17 = inlined_call_operand.vmem [shape: f32[32,32], index: 17, kind: input, shape index: {}]   ;;  %s3160_s18 = inlined_call_operand.vmem [shape: f32[32,1], index: 18, kind: input, shape index: {}]   ;;  %s3161_s19 = inlined_call_operand.hbm [shape: f32[2,16,64], index: 19, kind: output, shape index: {0}]   ;;  %s3162_s20 = inlined_call_operand.hbm [shape: f32[2,16,256], index: 20, kind: output, shape index: {1}]  }
   0x1   :  { %3200 = sst [smem:[#allocation27_spill]] %s3142_s0 }
   0x2   :  { %3201 = sst [smem:[#allocation28_spill]] %s3143_s1 }
   0x3   :  { %3202 = sst [smem:[#allocation29_spill]] %s3144_s2 }
   0x4   :  { %3203 = sst [smem:[#allocation30_spill]] %s3145_s3 }
   0x5   :  { %3204 = sst [smem:[#allocation31_spill]] %s3146_s4 }
   0x6   :  { %3205 = sst [smem:[#allocation32_spill]] %s3147_s5 }
   0x7   :  { %3206 = sst [smem:[#allocation33_spill]] %s3148_s6 }
   0x8   :  { %3207 = sst [smem:[#allocation34_spill]] %s3149_s7 }
   0x9   :  { %3208 = sst [smem:[#allocation35_spill]] %s3150_s8 }
   0xa   :  { %3209 = sst [smem:[#allocation36_spill]] %s3151_s9 }
   0xb   :  { %3210 = sst [smem:[#allocation37_spill]] %s3152_s10 }
   0xc   :  { %3211 = sst [smem:[#allocation38_spill]] %s3153_s11 }
   0xd   :  { %3212 = sst [smem:[#allocation39_spill]] %s3154_s12 }
   0xe   :  { %3213 = sst [smem:[#allocation40_spill]] %s3155_s13 }
   0xf   :  { %3214 = sst [smem:[#allocation41_spill]] %s3156_s14 }
  0x10   :  { %3215 = sst [smem:[#allocation42_spill]] %s3157_s15 }
  0x11   :  { %3216 = sst [smem:[#allocation43_spill]] %s3158_s16 }
  0x12   :  { %3217 = sst [smem:[#allocation44_spill]] %s3159_s17 }
  0x13   :  { %3218 = sst [smem:[#allocation45_spill]] %s3160_s18 }
  0x14   :  { %3219 = sst [smem:[#allocation46_spill]] %s3161_s19 }
  0x15   :  { %3220 = sst [smem:[#allocation47_spill]] %s3162_s20 }
  0x16   :  { %26 = vsyncpa [#allocation5], 0 }
  0x17   :  { %28 = vsyncpa [#allocation5 + $0x1], 0 }
  0x18   :  { %29 = vsyncpa [#allocation7], 0 }
  0x19   :  { %31 = vsyncpa [#allocation7 + $0x1], 0  ;;  %s2480_s1 = smov 0   ;;  %s2482_s22 = smov 0  }
  0x1a   :  { %s2484_s23 = smov 0   ;;  %s2486_s24 = smov 0  }
  0x1b   :  { %s2488_s2 = smov 0   ;;  %s2490_s25 = smov 0  }
  0x1c   :  { %s2492_s3 = smov 0   ;;  %s2494_s26 = smov 0  }
  0x1d   :  { %s2496_s27 = smov 0   ;;  %s2498_s28 = smov 0  }
  0x1e   :  { %s2500_s4 = smov 0  }
  0x1f LB: > { %3221 = sst [smem:[#allocation10_spill]] %s2326_s1  ;;  %s1918_s29 = sadd.s32 4294967295, %s2366_s4   ;;  %s2366_s4 = sphi %s2500_s4, %s37_s4   ;;  %s2362_s28 = sphi %s2498_s28, %s3293_s28   ;;  %s2358_s27 = sphi %s2496_s27, %s3292_s27   ;;  %s2354_s26 = sphi %s2494_s26, %s3291_s26   ;;  %s2350_s3 = sphi %s2492_s3, %s3290_s3   ;;  %s2346_s25 = sphi %s2490_s25, %s3289_s25   ;;  %s2342_s2 = sphi %s2488_s2, %s3288_s2   ;;  %s2338_s24 = sphi %s2486_s24, %s3287_s24   ;;  %s2334_s23 = sphi %s2484_s23, %s3286_s23   ;;  %s2330_s22 = sphi %s2482_s22, %s3285_s22   ;;  %s2326_s1 = sphi %s2480_s1, %s3284_s1  }
  0x20   : > { %3222 = sst [smem:[#allocation11_spill]] %s2330_s22  ;;  %s1919_s30 = sadd.s32 4294967294, %s2366_s4  }
  0x21   : > { %3223 = sst [smem:[#allocation12_spill]] %s2334_s23  ;;  %s46_s0 = sadd.s32 1, %s2358_s27 }
  0x22   : > { %3224 = sst [smem:[#allocation13_spill]] %s2338_s24  ;;  %s49_s21 = sadd.s32 1, %s2362_s28 }
  0x23   : > { %3225 = sst [smem:[#allocation14_spill]] %s2342_s2  ;;  %p47_p0 = scmp.ge.s32.totalorder %s46_s0, 2 }
  0x24   : > { %3226 = sst [smem:[#allocation15_spill]] %s2346_s25  ;;  %s482_s20 = sadd.s32 1, %s2346_s25 }
  0x25   : > { %3227 = sst [smem:[#allocation16_spill]] %s2358_s27  ;;  %p492_p1 = scmp.ne.s32.totalorder %s2346_s25, %s2342_s2 }
  0x26   : > { %3228 = sst [smem:[#allocation17_spill]] %s2362_s28  ;;  %p2542_p2 = scmp.eq.s32.totalorder %s1918_s29, 3 }
  0x27   : > { %3229 = sst [smem:[#allocation18_spill]] %s2366_s4  ;;  %s3295_s0 = smov (%p47_p0, %s46_s0), 0 }
  0x28   : > { %3231 = sst [smem:[#allocation19_spill]] %s3295_s0  ;;  %s3297_s21 = smov (!%p47_p0, %s49_s21), %s2362_s28 }
  0x29   : > { %p2551_p3 = por %p2542_p2, %p492_p1  ;;  %p498_p4 = scmp.ne.s32.totalorder %s2342_s2, %s2338_s24 }
  0x2a   : > { %p51_p5 = scmp.ge.s32.totalorder %s3297_s21, 2  ;;  %p2557_p6 = scmp.eq.s32.totalorder %s1919_s30, 3 }
  0x2b   : > { %s3232_s15 = scalar_select %p2551_p3, 1, 0 }
  0x2c   : > { %s506_s13 = ssub.s32 %s2358_s27, %s3295_s0  ;;  %s510_s16 = sadd.s32 1, %s2334_s23 }
  0x2d   : > { %3233 = sst [smem:[#allocation20_spill]] %s3232_s15  ;;  %s3299_s21 = smov (%p51_p5, %s3297_s21), 0 }
  0x2e   : > { %3235 = sst [smem:[#allocation21_spill]] %s3299_s21  ;;  %p2568_p7 = por %p2557_p6, %p498_p4 }
  0x2f   : > { %p520_p8 = scmp.ne.s32.totalorder %s2334_s23, %s2330_s22  ;;  %s479_s24 = ssub.s32 %s2362_s28, %s3299_s21 }
  0x30   : > { %s3236_s14 = scalar_select %p2568_p7, 1, 0 }
  0x31   : > { %p526_p9 = scmp.ne.s32.totalorder %s2330_s22, %s2326_s1  ;;  %p480_p10 = scmp.eq.s32.totalorder %s479_s24, 0 }
  0x32   : > { %3237 = sst [smem:[#allocation22_spill]] %s3236_s14  ;;  %s507_s30 = sor.u32 %s506_s13, %s479_s24 }
  0x33   : > { %p508_p11 = scmp.eq.s32.totalorder %s507_s30, 0  ;;  %p2580_p12 = por %p520_p8, %p2542_p2 }
  0x34   : > { %s2585_s0 = scalar_select %p480_p10, %s2346_s25, %s482_s20  }
  0x35   : > { %s3238_s15 = scalar_select %p2580_p12, 1, 0 }
  0x36   : > { %3240 = sst [smem:[#allocation24_spill]] %s2585_s0  ;;  %p2592_p13 = por %p526_p9, %p2557_p6 }
  0x37   : > { %3239 = sst [smem:[#allocation23_spill]] %s3238_s15  ;;  %p1922_p0 = scmp.ge.s32.totalorder %s2366_s4, 1 }
  0x38   : > { %s2588_s27 = scalar_select %p508_p11, %s2334_s23, %s510_s16  }
  0x39   : > { %s3242_s11 = scalar_select %p2592_p13, 1, 0 }
  0x3a   : > { %3241 = sst [smem:[#allocation25_spill]] %s2588_s27  ;;  %p626_p1 = scmp.lt.s32.totalorder %s2366_s4, 5 }
  0x3b   : > { %3243 = sst [smem:[#allocation26_spill]] %s3242_s11 }
  0x3c   : > { %p627_p4 = pnand %p1922_p0, %p626_p1 }
  0x3d   : > { %s3179_s13 = sand.u32 (!%p627_p4), 1, %s2342_s2   ;;  %s3181_s16 = sand.u32 (!%p627_p4), 1, %s2330_s22  }
  0x3e   : > { %630 = sbr.rel (%p627_p4) target bundleno = 1337 (0x539), region = 96  ;;  %s1923_s19 = sshll.u32 (!%p627_p4), %s3179_s13, 4 }
  0x3f   : > { %s1924_s20 = sshll.u32 (!%p627_p4), %s3181_s16, 4  ;;  %s1925_s24 = sshll.u32 (!%p627_p4), %s2350_s3, 4 }
  0x40   : > { %p713_p2 = scmp.lt.s32.totalorder (!%p627_p4), %s2350_s3, 1  ;;  %p708_p5 = scmp.lt.s32.totalorder (!%p627_p4), %s1925_s24, 31 }
  0x41   : > { %p719_p6 = scmp.lt.s32.totalorder (!%p627_p4), %s2354_s26, 1  ;;  %s3244_s28 = sld [smem:[#allocation28_spill]] (!%p627_p4) }
  0x42   : > { %s3245_s23 = sld [smem:[#allocation29_spill]] (!%p627_p4)  ;;  %s2635_s27 = scalar_lea.vmem (!%p627_p4), [#allocation6], %s1924_s20 }
  0x43   : > { %s2608_s29 = scalar_select %p713_p2, %s2350_s3, 1 }
  0x44   : > { %s3301_s24 = smov (!%p708_p5, %s1925_s24), 31  ;;  %s3246_s14 = sld [smem:[#allocation27_spill]] }
  0x45   : > { %s1926_s11 = sshll.u32 %s3301_s24, 3  ;;  %s3247_s9 = sld [smem:[#allocation31_spill]] }
  0x46   : > { %s720_s15 = scalar_select %p719_p6, %s2354_s26, 1 }
  0x47   : > { %s715_s0 = scalar_lea.vmem %s3244_s28, %s2608_s29  ;;  %s3248_s5 = sld [smem:[#allocation32_spill]] }
  0x48   : > { %s718_s13 = scalar_lea.vmem %s3245_s23, %s2608_s29  ;;  %s1927_s22 = sshll.u32 %s720_s15, 3 }
  0x49   : > { %s1928_s2 = sshll.u32 %s720_s15, 1  ;;  %s2633_s23 = scalar_lea.vmem [#allocation4], %s1923_s19 }
  0x4a   : > { %s2621_s4 = scalar_lea.vmem %s3246_s14, %s1926_s11  ;;  %s728_s10 = sadd.s32 %s1928_s2, %s2608_s29 }
  0x4b   : > { %s722_s18 = scalar_lea.vmem %s3247_s9, %s1927_s22  ;;  %s1929_s21 = sshll.u32 %s728_s10, 3 }
  0x4c   : > { %p1930_p8 = scmp.ne.s32.totalorder %s2350_s3, 0 }
  0x4d   : > { %s2631_s25 = scalar_lea.vmem %s3248_s5, %s1929_s21  ;;  %s3249_s6 = sld [smem:[#allocation33_spill]] (!%p1930_p8) }
  0x4e   : > { %734 = sbr.rel (%p1930_p8) target bundleno = 227 (0xe3), region = 100 }
  0x53   : > { %v735_v0 = vld [vmem:[%s722_s18] sm:$0xff]  ;;  %vm744_vm0 = vcmask 64512   ;;  %v742_v2 = vld [vmem:[%s3249_s6 + $0x30] sm:$0xff]  ;;  %v741_v5 = vld [vmem:[%s3249_s6 + $0x28] sm:$0xff]  ;;  %vm810_vm1 = vcmask 523264   ;;  %v2368_v9 = vmov 0.0  }
  0x54   : > { %v740_v1 = vld [vmem:[%s3249_s6 + $0x20] sm:$0xff]  ;;  %2054 = vmatpush.msra.mxu2 %v735_v0  ;;  %2055 = vmatpush.msra.mxu3 %v735_v0  ;;  %v738_v4 = vld [vmem:[%s3249_s6 + $0x10] sm:$0xff]  ;;  %v743_v6 = vld [vmem:[%s3249_s6 + $0x38] sm:$0xff]  ;;  %819 = vst.msk [vmem:[#allocation3] sm:$0xff] %vm810_vm1, %v2368_v9 }
  0x55   : > { %v736_v3 = vld [vmem:[%s3249_s6] sm:$0xff]  ;;  %1935 = vmatmul.msk.f32.vlgmr.msra.gmra.mxu2 %vm744_vm0, %v740_v1  ;;  %1937 = vmatmul.msk.f32.vlgmr.msra.gmra.mxu3 %vm744_vm0, %v742_v2  ;;  %v737_v7 = vld [vmem:[%s3249_s6 + $0x8] sm:$0xff]  ;;  %v739_v8 = vld [vmem:[%s3249_s6 + $0x18] sm:$0xff]  ;;  %820 = vst.msk [vmem:[#allocation3 + $0x8] sm:$0xff] %vm810_vm1, %v2368_v9 }
  0x56   : > { %784 = vmatpush.msra.mxu0 %v735_v0  ;;  %2053 = vmatpush.msra.mxu1 %v735_v0  ;;  %821 = vst.msk [vmem:[#allocation3 + $0x10] sm:$0xff] %vm810_vm1, %v2368_v9 }
  0x57   : > { %1931 = vmatmul.msk.f32.vlgmr.msra.gmra.mxu0 %vm744_vm0, %v736_v3  ;;  %1933 = vmatmul.msk.f32.vlgmr.msra.gmra.mxu1 %vm744_vm0, %v738_v4  ;;  %822 = vst.msk [vmem:[#allocation3 + $0x18] sm:$0xff] %vm810_vm1, %v2368_v9 }
  0x5d   : > { %1936 = vmatmul.msk.f32.gmra.mxu2 %vm744_vm0, %v741_v5  ;;  %1938 = vmatmul.msk.f32.gmra.mxu3 %vm744_vm0, %v743_v6 }
  0x5f   : > { %1932 = vmatmul.msk.f32.gmra.mxu0 %vm744_vm0, %v737_v7  ;;  %1934 = vmatmul.msk.f32.gmra.mxu1 %vm744_vm0, %v739_v8 }
  0xd4   : > { %v786_v10 = vpop.f32.mrf.mxu0  ;;  %v792_v11 = vpop.f32.mrf.mxu1 }
  0xd5   : > { %811 = vst.msk [vmem:[#allocation2] sm:$0xff] %vm810_vm1, %v786_v10 }
  0xd6   : > { %813 = vst.msk [vmem:[#allocation2 + $0x10] sm:$0xff] %vm810_vm1, %v792_v11 }
  0xd8   : > { %v798_v12 = vpop.f32.mrf.mxu2  ;;  %v804_v13 = vpop.f32.mrf.mxu3 }
  0xd9   : > { %815 = vst.msk [vmem:[#allocation2 + $0x20] sm:$0xff] %vm810_vm1, %v798_v12 }
  0xda   : > { %817 = vst.msk [vmem:[#allocation2 + $0x30] sm:$0xff] %vm810_vm1, %v804_v13 }
  0xdc   : > { %v789_v14 = vpop.f32.mrf.mxu0  ;;  %v795_v15 = vpop.f32.mrf.mxu1 }
  0xdd   : > { %812 = vst.msk [vmem:[#allocation2 + $0x8] sm:$0xff] %vm810_vm1, %v789_v14 }
  0xde   : > { %814 = vst.msk [vmem:[#allocation2 + $0x18] sm:$0xff] %vm810_vm1, %v795_v15 }
  0xe0   : > { %v801_v16 = vpop.f32.mrf.mxu2  ;;  %v807_v17 = vpop.f32.mrf.mxu3 }
  0xe1   : > { %816 = vst.msk [vmem:[#allocation2 + $0x28] sm:$0xff] %vm810_vm1, %v801_v16 }
  0xe2   : > { %818 = vst.msk [vmem:[#allocation2 + $0x38] sm:$0xff] %vm810_vm1, %v807_v17 }
  0xe3 PF: > { %s3250_s8 = sld [smem:[#allocation35_spill]]  ;;  %v841_v20 = vlaneseq  ;;  %v2369_v21 = vmov 0   ;;  %v2186_v23 = vld [vmem:[%s718_s13] ss:$0 sm:$0xff]  ;;  %v2370_v28 = vmov 1.0   ;;  %vm1011_vm6 = vcmask 64512  }
  0xe4   : > { %2184 = vset.pattern.permute.xlu1 %v2369_v21  ;;  %2183 = vset.pattern.permute.xlu0 %v2369_v21  ;;  %v1006_v33 = vld [vmem:[%s2631_s25] sm:$0xff]  ;;  %s3252_s7 = sld [smem:[#allocation34_spill]]  ;;  %v836_v36 = vld [vmem:[%s2621_s4 + $0x68] sm:$0xff]  ;;  %v838_v39 = vld [vmem:[%s2621_s4 + $0x78] sm:$0xff]  ;;  %vm1053_vm11 = vcmask 523264   ;;  %p2029_p9 = scmp.ne.s32.totalorder %s2350_s3, 1 }
  0xe5   : > { %v2689_v22 = vshrl.u32 %v841_v20, 7  ;;  %2185 = vset.pattern.permute.xlu2 %v2369_v21  ;;  %1039 = vmatpush.msra.mxu0 %v1006_v33  ;;  %v835_v37 = vld [vmem:[%s2621_s4 + $0x60] sm:$0xff]  ;;  %v1004_v40 = vld [vmem:[#allocation2 + $0x30] sm:$0xff]  ;;  %s3254_s24 = sld [smem:[#allocation37_spill]]  ;;  %v834_v44 = vld [vmem:[%s2621_s4 + $0x58] sm:$0xff]  ;;  %v2853_v9 = vand.u32 127, %v841_v20 }
  0xe6   : > { %v2187_v38 = vld [vmem:[%s715_s0] ss:$0 sm:$0xff]  ;;  %948 = vperm.xlu2 %2185, %v838_v39   ;;  %v837_v45 = vld [vmem:[%s2621_s4 + $0x70] sm:$0xff]  ;;  %v832_v50 = vld [vmem:[%s2621_s4 + $0x48] sm:$0xff]  ;;  %s3256_s19 = sld [smem:[#allocation45_spill]] }
  0xe7   : > { %v849_v24 = vadd.s32 56, %v2689_v22  ;;  %v848_v25 = vadd.s32 48, %v2689_v22  ;;  %v2699_v26 = vadd.s32 40, %v2689_v22  ;;  %v2702_v27 = vadd.s32 32, %v2689_v22  ;;  %v1002_v42 = vld [vmem:[#allocation2 + $0x20] sm:$0xff]  ;;  %v830_v55 = vld [vmem:[%s2621_s4 + $0x38] sm:$0xff] }
  0xe8   : > { %v2713_v31 = vadd.s32 24, %v2689_v22  ;;  %v2720_v32 = vadd.s32 16, %v2689_v22  ;;  %v2733_v35 = vadd.s32 8, %v2689_v22  ;;  %vm876_vm10 = vcmp.eq.s32.totalorder %v2689_v22, %v2186_v23  ;;  %v1003_v48 = vld [vmem:[#allocation2 + $0x28] sm:$0xff]  ;;  %v998_v52 = vld [vmem:[#allocation2] sm:$0xff]  ;;  %v833_v56 = vld [vmem:[%s2621_s4 + $0x50] sm:$0xff] }
  0xe9   : > { %v1141_v18 = vld [vmem:[%s3250_s8 + $0x8] sm:$0xff]  ;;  %v1143_v19 = vld [vmem:[%s3250_s8 + $0x18] sm:$0xff]  ;;  %vm883_vm2 = vcmp.eq.s32.totalorder %v849_v24, %v2186_v23  ;;  %vm882_vm3 = vcmp.eq.s32.totalorder %v848_v25, %v2186_v23  ;;  %v1140_v29 = vld [vmem:[%s3250_s8] sm:$0xff]  ;;  %vm881_vm4 = vcmp.eq.s32.totalorder %v2699_v26, %v2186_v23  ;;  %vm880_vm5 = vcmp.eq.s32.totalorder %v2702_v27, %v2186_v23  ;;  %s3257_s9 = sld [smem:[#allocation36_spill]] }
  0xea   : > { %1151 = vperm.xlu1 %2184, %v1141_v18   ;;  %1161 = vperm.xlu0 %2183, %v1143_v19   ;;  %v1142_v30 = vld [vmem:[%s3250_s8 + $0x10] sm:$0xff]  ;;  %v1007_v34 = vld [vmem:[%s3252_s7] sm:$0xff]  ;;  %vm879_vm7 = vcmp.eq.s32.totalorder %v2713_v31, %v2186_v23  ;;  %vm878_vm8 = vcmp.eq.s32.totalorder %v2720_v32, %v2186_v23  ;;  %vm877_vm9 = vcmp.eq.s32.totalorder %v2733_v35, %v2186_v23  ;;  %v1008_v41 = vld [vmem:[%s3252_s7 + $0x8] sm:$0xff]  ;;  %s3258_s10 = sld [smem:[#allocation44_spill]] }
  0xeb   : > { %2056 = vmatpush.msk.msra.mxu2 %vm883_vm2, %v2370_v28  ;;  %1975 = vmatpush.msk.msra.mxu1 %vm883_vm2, %v2370_v28  ;;  %vm858_vm12 = vcmp.eq.s32.totalorder %v849_v24, %v2187_v38  ;;  %vm857_vm13 = vcmp.eq.s32.totalorder %v848_v25, %v2187_v38  ;;  %s3255_s21 = smov %s3254_s24  ;;  %v1186_v43 = vld [vmem:[%s3254_s24 + $0x30] sm:$0xff]  ;;  %vm856_vm14 = vcmp.eq.s32.totalorder %v2699_v26, %v2187_v38  ;;  %v1005_v46 = vld [vmem:[#allocation2 + $0x38] sm:$0xff]  ;;  %v831_v54 = vld [vmem:[%s2621_s4 + $0x40] sm:$0xff]  ;;  %s3260_s0 = sld [smem:[#allocation39_spill]] (!%p2029_p9) }
  0xec   : > { %1971 = vmatmul.msk.f32.vlgmr.msra.gmra.mxu0 %vm1011_vm6, %v1007_v34  ;;  %vm855_vm15 = vcmp.eq.s32.totalorder %v2702_v27, %v2187_v38  ;;  %v1009_v47 = vld [vmem:[%s3252_s7 + $0x10] sm:$0xff]  ;;  %vm854_vm0 = vcmp.eq.s32.totalorder %v2713_v31, %v2187_v38  ;;  %vm853_vm1 = vcmp.eq.s32.totalorder %v2720_v32, %v2187_v38  ;;  %v1185_v49 = vld [vmem:[%s3255_s21 + $0x28] sm:$0xff]  ;;  %vm852_vm2 = vcmp.eq.s32.totalorder %v2733_v35, %v2187_v38  ;;  %v1187_v51 = vld [vmem:[%s3255_s21 + $0x38] sm:$0xff]  ;;  %s3261_s30 = sld [smem:[#allocation38_spill]] (!%p2029_p9) }
  0xed   : > { %2057 = vmatpush.msk.msra.mxu2 %vm882_vm3, %v2370_v28  ;;  %1976 = vmatpush.msk.msra.mxu1 %vm882_vm3, %v2370_v28  ;;  %vm851_vm3 = vcmp.eq.s32.totalorder %v2689_v22, %v2187_v38  ;;  %v1010_v53 = vld [vmem:[%s3252_s7 + $0x18] sm:$0xff]  ;;  %v999_v57 = vld [vmem:[#allocation2 + $0x8] sm:$0xff]  ;;  %v827_v59 = vld [vmem:[%s2621_s4 + $0x20] sm:$0xff]  ;;  %s3264_s14 = sld [smem:[#allocation43_spill]] (!%p2029_p9) }
  0xee   : > { %945 = vperm.xlu2 %2185, %v837_v45   ;;  %v828_v58 = vld [vmem:[%s2621_s4 + $0x28] sm:$0xff]  ;;  %v1184_v60 = vld [vmem:[%s3255_s21 + $0x20] sm:$0xff]  ;;  %v1000_v61 = vld [vmem:[#allocation2 + $0x10] sm:$0xff]  ;;  %s3267_s25 = sld [smem:[#allocation42_spill]] (!%p2029_p9) }
  0xef   : > { %2058 = vmatpush.msk.msra.mxu2 %vm881_vm4, %v2370_v28  ;;  %1977 = vmatpush.msk.msra.mxu1 %vm881_vm4, %v2370_v28  ;;  %v825_v62 = vld [vmem:[%s2621_s4 + $0x10] sm:$0xff]  ;;  %v824_v63 = vld [vmem:[%s2621_s4 + $0x8] sm:$0xff]  ;;  %v1001_v1 = vld [vmem:[#allocation2 + $0x18] sm:$0xff] }
  0xf0   : > { %v829_v0 = vld [vmem:[%s2621_s4 + $0x30] sm:$0xff]  ;;  %v1180_v2 = vld [vmem:[%s3255_s21] sm:$0xff]  ;;  %v1181_v3 = vld [vmem:[%s3255_s21 + $0x8] sm:$0xff] }
  0xf1   : > { %2059 = vmatpush.msk.msra.mxu2 %vm880_vm5, %v2370_v28  ;;  %1978 = vmatpush.msk.msra.mxu1 %vm880_vm5, %v2370_v28  ;;  %v826_v4 = vld [vmem:[%s2621_s4 + $0x18] sm:$0xff]  ;;  %v1339_v6 = vld [vmem:[%s3256_s19] sm:$0xff]  ;;  %v1341_v7 = vld [vmem:[%s3256_s19 + $0x10] sm:$0xff] }
  0xf2   : > { %1146 = vperm.xlu1 %2184, %v1140_v29   ;;  %1156 = vperm.xlu0 %2183, %v1142_v30   ;;  %v1183_v5 = vld [vmem:[%s3255_s21 + $0x18] sm:$0xff] }
  0xf3   : > { %2060 = vmatpush.msk.msra.mxu2 %vm879_vm7, %v2370_v28  ;;  %1979 = vmatpush.msk.msra.mxu1 %vm879_vm7, %v2370_v28  ;;  %v1342_v8 = vld [vmem:[%s3256_s19 + $0x18] sm:$0xff] }
  0xf4   : > { %1972 = vmatmul.msk.f32.gmra.mxu0 %vm1011_vm6, %v1008_v41  ;;  %s3268_s20 = smov (!%p2029_p9), %s3267_s25 }
  0xf5   : > { %2061 = vmatpush.msk.msra.mxu2 %vm878_vm8, %v2370_v28  ;;  %1980 = vmatpush.msk.msra.mxu1 %vm878_vm8, %v2370_v28 }
  0xf6   : > { %1225 = vperm.xlu2 %2185, %v1187_v51  }
  0xf7   : > { %2062 = vmatpush.msk.msra.mxu2 %vm877_vm9, %v2370_v28  ;;  %1981 = vmatpush.msk.msra.mxu1 %vm877_vm9, %v2370_v28 }
  0xf9   : > { %2063 = vmatpush.msk.msra.mxu2 %vm876_vm10, %v2370_v28  ;;  %1982 = vmatpush.msk.msra.mxu1 %vm876_vm10, %v2370_v28 }
  0xfa   : > { %942 = vperm.xlu0 %2183, %v836_v36   ;;  %939 = vperm.xlu1 %2184, %v835_v37  }
  0xfb   : > { %1985 = vmatmul.msk.f32.vlgmr.msra.gmra.mxu2 %vm1053_vm11, %v1004_v40  ;;  %1983 = vmatmul.msk.f32.vlgmr.msra.gmra.mxu1 %vm1053_vm11, %v1002_v42 }
  0xfc   : > { %1987 = vmatpush.msk.msrb.mxu2 %vm858_vm12, %v2370_v28  ;;  %1973 = vmatmul.msk.f32.gmra.mxu0 %vm1011_vm6, %v1009_v47 }
  0xfe   : > { %1988 = vmatpush.msk.msrb.mxu2 %vm857_vm13, %v2370_v28  ;;  %933 = vperm.xlu2 %2185, %v833_v56  }
 0x100   : > { %1989 = vmatpush.msk.msrb.mxu2 %vm856_vm14, %v2370_v28 }
 0x102   : > { %1220 = vperm.xlu1 %2184, %v1186_v43   ;;  %936 = vperm.xlu0 %2183, %v834_v44  }
 0x103   : > { %1990 = vmatpush.msk.msrb.mxu2 %vm855_vm15, %v2370_v28  ;;  %1984 = vmatmul.msk.f32.gmra.mxu1 %vm1053_vm11, %v1003_v48 }
 0x104   : > { %1986 = vmatmul.msk.f32.gmra.mxu2 %vm1053_vm11, %v1005_v46  ;;  %1974 = vmatmul.msk.f32.gmra.mxu0 %vm1011_vm6, %v1010_v53 }
 0x105   : > { %1991 = vmatpush.msk.msrb.mxu2 %vm854_vm0, %v2370_v28 }
 0x106   : > { %1210 = vperm.xlu2 %2185, %v1184_v60  }
 0x107   : > { %1992 = vmatpush.msk.msrb.mxu2 %vm853_vm1, %v2370_v28 }
 0x109   : > { %1993 = vmatpush.msk.msrb.mxu2 %vm852_vm2, %v2370_v28 }
 0x10a   : > { %1215 = vperm.xlu0 %2183, %v1185_v49   ;;  %930 = vperm.xlu1 %2184, %v832_v50  }
 0x10b   : > { %1994 = vmatpush.msk.msrb.mxu2 %vm851_vm3, %v2370_v28 }
 0x10c   : > { %1995 = vmatmul.msk.f32.vlgmr.msrb.gmra.mxu2 %vm1053_vm11, %v998_v52 }
 0x10e   : > { %921 = vperm.xlu2 %2185, %v829_v0   ;;  %v823_v0 = vld [vmem:[%s2621_s4] sm:$0xff]  ;;  %s3259_s4 = sld [smem:[#allocation30_spill]] (!%p2029_p9) }
 0x112   : > { %927 = vperm.xlu0 %2183, %v831_v54   ;;  %924 = vperm.xlu1 %2184, %v830_v55  }
 0x114   : > { %1996 = vmatmul.msk.f32.gmra.mxu2 %vm1053_vm11, %v999_v57 }
 0x116   : > { %912 = vperm.xlu2 %2185, %v826_v4   ;;  %v1176_v4 = vld [vmem:[%s3257_s9 + $0x20] sm:$0xff] }
 0x11a   : > { %918 = vperm.xlu0 %2183, %v828_v58   ;;  %915 = vperm.xlu1 %2184, %v827_v59  }
 0x11c   : > { %1997 = vmatmul.msk.f32.gmra.mxu2 %vm1053_vm11, %v1000_v61 }
 0x11e   : > { %903 = vperm.xlu2 %2185, %v823_v0  }
 0x122   : > { %909 = vperm.xlu0 %2183, %v825_v62   ;;  %906 = vperm.xlu1 %2184, %v824_v63   ;;  %v1172_v62 = vld [vmem:[%s3257_s9] sm:$0xff]  ;;  %v1173_v63 = vld [vmem:[%s3257_s9 + $0x8] sm:$0xff] }
 0x124   : > { %1998 = vmatmul.msk.f32.gmra.mxu2 %vm1053_vm11, %v1001_v1  ;;  %v1174_v1 = vld [vmem:[%s3257_s9 + $0x10] sm:$0xff] }
 0x12a   : > { %1190 = vperm.xlu0 %2183, %v1180_v2   ;;  %1195 = vperm.xlu1 %2184, %v1181_v3   ;;  %v1175_v2 = vld [vmem:[%s3257_s9 + $0x18] sm:$0xff]  ;;  %v1182_v3 = vld [vmem:[%s3255_s21 + $0x10] sm:$0xff] }
 0x12b   : > { %1200 = vperm.xlu2 %2185, %v1182_v3  }
 0x132   : > { %1205 = vperm.xlu0 %2183, %v1183_v5   ;;  %1345 = vperm.xlu1 %2184, %v1339_v6   ;;  %v1340_v5 = vld [vmem:[%s3256_s19 + $0x8] sm:$0xff] }
 0x133   : > { %1350 = vperm.xlu2 %2185, %v1340_v5   ;;  %v1177_v6 = vld [vmem:[%s3257_s9 + $0x28] sm:$0xff] }
 0x13a   : > { %1355 = vperm.xlu0 %2183, %v1341_v7   ;;  %1360 = vperm.xlu1 %2184, %v1342_v8   ;;  %v1178_v7 = vld [vmem:[%s3257_s9 + $0x30] sm:$0xff]  ;;  %v1179_v8 = vld [vmem:[%s3257_s9 + $0x38] sm:$0xff] }
 0x140   : > { %v949_v10 = vpop.permute.xlu2 %948 }
 0x141   : > { %vm965_vm4 = vcmp.eq.s32.totalorder %v949_v10, %v2853_v9 }
 0x142   : > { %2007 = vmatpush.msk.msrb.mxu0 %vm965_vm4, %v2370_v28  ;;  %vm1228_vm4 = vcmask 261120  }
 0x148   : > { %v946_v13 = vpop.permute.xlu2 %945 }
 0x149   : > { %vm964_vm5 = vcmp.eq.s32.totalorder %v946_v13, %v2853_v9 }
 0x14a   : > { %2008 = vmatpush.msk.msrb.mxu0 %vm964_vm5, %v2370_v28 }
 0x150   : > { %v2867_v16 = vpop.permute.xlu2 %1225 }
 0x158   : > { %v934_v19 = vpop.permute.xlu2 %933 }
 0x159   : > { %vm960_vm9 = vcmp.eq.s32.totalorder %v934_v19, %v2853_v9 }
 0x15c   : > { %v2857_v11 = vpop.permute.xlu1 %1151  ;;  %v2859_v12 = vpop.permute.xlu0 %1161 }
 0x160   : > { %v2878_v22 = vpop.permute.xlu2 %1210 }
 0x164   : > { %v2863_v14 = vpop.permute.xlu1 %1146  ;;  %v2865_v15 = vpop.permute.xlu0 %1156 }
 0x168   : > { %v922_v26 = vpop.permute.xlu2 %921 }
 0x169   : > { %vm956_vm14 = vcmp.eq.s32.totalorder %v922_v26, %v2853_v9  ;;  %v1041_v31 = vpop.f32.mrf.mxu0 }
 0x16c   : > { %v943_v17 = vpop.permute.xlu0 %942  ;;  %v940_v18 = vpop.permute.xlu1 %939 }
 0x16d   : > { %vm963_vm6 = vcmp.eq.s32.totalorder %v943_v17, %v2853_v9  ;;  %vm962_vm7 = vcmp.eq.s32.totalorder %v940_v18, %v2853_v9 }
 0x16e   : > { %2009 = vmatpush.msk.msrb.mxu0 %vm963_vm6, %v2370_v28 }
 0x170   : > { %2010 = vmatpush.msk.msrb.mxu0 %vm962_vm7, %v2370_v28  ;;  %v913_v32 = vpop.permute.xlu2 %912 }
 0x171   : > { %vm953_vm1 = vcmp.eq.s32.totalorder %v913_v32, %v2853_v9  ;;  %v1044_v38 = vpop.f32.mrf.mxu0 }
 0x174   : > { %v2873_v20 = vpop.permute.xlu1 %1220  ;;  %v937_v21 = vpop.permute.xlu0 %936 }
 0x175   : > { %vm961_vm8 = vcmp.eq.s32.totalorder %v937_v21, %v2853_v9 }
 0x176   : > { %2011 = vmatpush.msk.msrb.mxu0 %vm961_vm8, %v2370_v28 }
 0x178   : > { %2012 = vmatpush.msk.msrb.mxu0 %vm960_vm9, %v2370_v28  ;;  %v1083_v40 = vpop.f32.mrf.mxu1  ;;  %v904_v10 = vpop.permute.xlu2 %903 }
 0x179   : > { %v1047_v41 = vpop.f32.mrf.mxu0  ;;  %vm950_vm5 = vcmp.eq.s32.totalorder %v904_v10, %v2853_v9 }
 0x17c   : > { %v2881_v23 = vpop.permute.xlu0 %1215  ;;  %v931_v24 = vpop.permute.xlu1 %930 }
 0x17d   : > { %vm959_vm10 = vcmp.eq.s32.totalorder %v931_v24, %v2853_v9 }
 0x17e   : > { %2013 = vmatpush.msk.msrb.mxu0 %vm959_vm10, %v2370_v28  ;;  %v1089_v25 = vpop.f32.mrf.mxu2 }
 0x180   : > { %v1086_v43 = vpop.f32.mrf.mxu1 }
 0x181   : > { %v1050_v47 = vpop.f32.mrf.mxu0 }
 0x184   : > { %v928_v27 = vpop.permute.xlu0 %927  ;;  %v925_v29 = vpop.permute.xlu1 %924 }
 0x185   : > { %vm958_vm12 = vcmp.eq.s32.totalorder %v928_v27, %v2853_v9  ;;  %vm957_vm13 = vcmp.eq.s32.totalorder %v925_v29, %v2853_v9  ;;  %v1201_v18 = vpop.permute.xlu2 %1200 }
 0x186   : > { %2014 = vmatpush.msk.msrb.mxu0 %vm958_vm12, %v2370_v28 }
 0x187   : > { %v1092_v30 = vpop.f32.mrf.mxu2 }
 0x188   : > { %2015 = vmatpush.msk.msrb.mxu0 %vm957_vm13, %v2370_v28 }
 0x18a   : > { %2016 = vmatpush.msk.msrb.mxu0 %vm956_vm14, %v2370_v28 }
 0x18c   : > { %v919_v33 = vpop.permute.xlu0 %918  ;;  %v916_v34 = vpop.permute.xlu1 %915 }
 0x18d   : > { %vm955_vm15 = vcmp.eq.s32.totalorder %v919_v33, %v2853_v9  ;;  %vm954_vm0 = vcmp.eq.s32.totalorder %v916_v34, %v2853_v9  ;;  %v1335_v34 = vld [vmem:[%s3258_s10] sm:$0xff] }
 0x18e   : > { %2017 = vmatpush.msk.msrb.mxu0 %vm955_vm15, %v2370_v28 }
 0x18f   : > { %v1124_v35 = vpop.f32.mrf.mxu2 }
 0x190   : > { %2018 = vmatpush.msk.msrb.mxu0 %vm954_vm0, %v2370_v28  ;;  %v1125_v48 = vadd.f32 %v1124_v35, %v1083_v40  ;;  %v1296_v40 = vld [vmem:[#allocation3 + $0x10] sm:$0xff] }
 0x192   : > { %2019 = vmatpush.msk.msrb.mxu0 %vm953_vm1, %v2370_v28  ;;  %v1136_v53 = vadd.f32 %v1125_v48, %v1041_v31 }
 0x194   : > { %v910_v36 = vpop.permute.xlu0 %909  ;;  %v907_v37 = vpop.permute.xlu1 %906  ;;  %v1164_v59 = vadd.f32 %v2863_v14, %v1136_v53 }
 0x195   : > { %vm952_vm2 = vcmp.eq.s32.totalorder %v910_v36, %v2853_v9  ;;  %vm951_vm3 = vcmp.eq.s32.totalorder %v907_v37, %v2853_v9  ;;  %v1295_v37 = vld [vmem:[#allocation3 + $0x8] sm:$0xff] }
 0x196   : > { %2020 = vmatpush.msk.msrb.mxu0 %vm952_vm2, %v2370_v28  ;;  %v1168_v61 = vmax.f32 %v1164_v59, 0.0 }
 0x197   : > { %v1127_v39 = vpop.f32.mrf.mxu2 }
 0x198   : > { %2021 = vmatpush.msk.msrb.mxu0 %vm951_vm3, %v2370_v28  ;;  %v1128_v45 = vadd.f32 %v1127_v39, %v1086_v43  ;;  %v1297_v43 = vld [vmem:[#allocation3 + $0x18] sm:$0xff] }
 0x19a   : > { %v1137_v51 = vadd.f32 %v1128_v45, %v1044_v38  ;;  %2022 = vmatpush.msk.msrb.mxu0 %vm950_vm5, %v2370_v28 }
 0x19c   : > { %v1165_v57 = vadd.f32 %v2857_v11, %v1137_v51  ;;  %v1191_v11 = vpop.permute.xlu0 %1190  ;;  %v1196_v14 = vpop.permute.xlu1 %1195 }
 0x19e   : > { %v1169_v60 = vmax.f32 %v1165_v57, 0.0 }
 0x19f   : > { %v1130_v42 = vpop.f32.mrf.mxu2 }
 0x1a0   : > { %v1131_v44 = vadd.f32 %v1130_v42, %v1089_v25 }
 0x1a2   : > { %v1138_v49 = vadd.f32 %v1131_v44, %v1047_v41 }
 0x1a4   : > { %v1166_v55 = vadd.f32 %v2865_v15, %v1138_v49  ;;  %v1206_v24 = vpop.permute.xlu0 %1205 }
 0x1a6   : > { %v1170_v58 = vmax.f32 %v1166_v55, 0.0 }
 0x1a7   : > { %v1133_v46 = vpop.f32.mrf.mxu2 }
 0x1a8   : > { %v1134_v50 = vadd.f32 %v1133_v46, %v1092_v30  ;;  %v1346_v46 = vpop.permute.xlu1 %1345 }
 0x1aa   : > { %v1139_v52 = vadd.f32 %v1134_v50, %v1050_v47  ;;  %v1351_v50 = vpop.permute.xlu2 %1350 }
 0x1ac   : > { %v1167_v54 = vadd.f32 %v2859_v12, %v1139_v52 }
 0x1ae   : > { %v1171_v56 = vmax.f32 %v1167_v54, 0.0 }
 0x1b0   : > { %1265 = vmatpush.msra.mxu3 %v1171_v56 }
 0x1b2   : > { %1266 = vmatpush.msra.mxu3 %v1170_v58 }
 0x1b4   : > { %1267 = vmatpush.msra.mxu3 %v1169_v60  ;;  %v1356_v60 = vpop.permute.xlu0 %1355 }
 0x1b6   : > { %1268 = vmatpush.msra.mxu3 %v1168_v61 }
 0x1b7   : > { %1999 = vmatmul.msk.f32.vlgmr.msra.gmra.mxu3 %vm1228_vm4, %v1172_v62 }
 0x1bf   : > { %2000 = vmatmul.msk.f32.gmra.mxu3 %vm1228_vm4, %v1173_v63 }
 0x1c7   : > { %2001 = vmatmul.msk.f32.gmra.mxu3 %vm1228_vm4, %v1174_v1 }
 0x1cf   : > { %2002 = vmatmul.msk.f32.gmra.mxu3 %vm1228_vm4, %v1175_v2 }
 0x1d7   : > { %2003 = vmatmul.msk.f32.gmra.mxu3 %vm1228_vm4, %v1176_v4 }
 0x1df   : > { %2004 = vmatmul.msk.f32.gmra.mxu3 %vm1228_vm4, %v1177_v6 }
 0x1e7   : > { %2005 = vmatmul.msk.f32.gmra.mxu3 %vm1228_vm4, %v1178_v7  ;;  %v1361_v7 = vpop.permute.xlu1 %1360 }
 0x1ef   : > { %2006 = vmatmul.msk.f32.gmra.mxu3 %vm1228_vm4, %v1179_v8 }
 0x23a   : > { %v1270_v12 = vpop.f32.mrf.mxu3 }
 0x23b   : > { %v1271_v13 = vadd.f32 %v1270_v12, %v1191_v11 }
 0x23d   : > { %1314 = vmatmul.f32.vlgmr.msrb.gmra.mxu0 %v1271_v13 }
 0x242   : > { %v1273_v15 = vpop.f32.mrf.mxu3 }
 0x243   : > { %v1274_v17 = vadd.f32 %v1273_v15, %v1196_v14 }
 0x245   : > { %1317 = vmatmul.f32.gmra.mxu0 %v1274_v17 }
 0x24a   : > { %v1276_v19 = vpop.f32.mrf.mxu3 }
 0x24b   : > { %v1277_v21 = vadd.f32 %v1276_v19, %v1201_v18 }
 0x24d   : > { %1320 = vmatmul.f32.gmra.mxu0 %v1277_v21 }
 0x252   : > { %v1279_v25 = vpop.f32.mrf.mxu3 }
 0x253   : > { %v1280_v26 = vadd.f32 %v1279_v25, %v1206_v24 }
 0x255   : > { %1323 = vmatmul.f32.gmra.mxu0 %v1280_v26 }
 0x25a   : > { %v1282_v27 = vpop.f32.mrf.mxu3 }
 0x25b   : > { %v1283_v33 = vadd.f32 %v1282_v27, %v2878_v22  ;;  %v1338_v22 = vld [vmem:[%s3258_s10 + $0x18] sm:$0xff] }
 0x262   : > { %v1285_v9 = vpop.f32.mrf.mxu3 }
 0x263   : > { %v1286_v32 = vadd.f32 %v1285_v9, %v2881_v23  ;;  %v1294_v23 = vld [vmem:[#allocation3] sm:$0xff] }
 0x26a   : > { %v1288_v29 = vpop.f32.mrf.mxu3 }
 0x26b   : > { %v1289_v31 = vadd.f32 %v1288_v29, %v2873_v20  ;;  %v1337_v20 = vld [vmem:[%s3258_s10 + $0x10] sm:$0xff] }
 0x272   : > { %v1291_v28 = vpop.f32.mrf.mxu3 }
 0x273   : > { %v1292_v30 = vadd.f32 %v1291_v28, %v2867_v16  ;;  %v1336_v16 = vld [vmem:[%s3258_s10 + $0x8] sm:$0xff] }
 0x275   : > { %1387 = vmatpush.msrb.mxu1 %v1292_v30 }
 0x277   : > { %1388 = vmatpush.msrb.mxu1 %v1289_v31 }
 0x279   : > { %1389 = vmatpush.msrb.mxu1 %v1286_v32 }
 0x27b   : > { %1390 = vmatpush.msrb.mxu1 %v1283_v33 }
 0x27c   : > { %2023 = vmatmul.msk.f32.vlgmr.msrb.gmra.mxu1 %vm1228_vm4, %v1335_v34 }
 0x284   : > { %2024 = vmatmul.msk.f32.gmra.mxu1 %vm1228_vm4, %v1336_v16 }
 0x28c   : > { %2025 = vmatmul.msk.f32.gmra.mxu1 %vm1228_vm4, %v1337_v20 }
 0x294   : > { %2026 = vmatmul.msk.f32.gmra.mxu1 %vm1228_vm4, %v1338_v22 }
 0x2ba   : > { %v1315_v35 = vpop.f32.mrf.mxu0 }
 0x2bb   : > { %v1327_v36 = vadd.f32 %v1315_v35, %v1294_v23 }
 0x2bd   : > { %1331 = vst.msk [vmem:[#allocation3] sm:$0xff] %vm1053_vm11, %v1327_v36 }
 0x2c2   : > { %v1318_v38 = vpop.f32.mrf.mxu0 }
 0x2c3   : > { %v1328_v39 = vadd.f32 %v1318_v38, %v1295_v37 }
 0x2c5   : > { %1332 = vst.msk [vmem:[#allocation3 + $0x8] sm:$0xff] %vm1053_vm11, %v1328_v39 }
 0x2ca   : > { %v1321_v41 = vpop.f32.mrf.mxu0 }
 0x2cb   : > { %v1329_v42 = vadd.f32 %v1321_v41, %v1296_v40 }
 0x2cd   : > { %1333 = vst.msk [vmem:[#allocation3 + $0x10] sm:$0xff] %vm1053_vm11, %v1329_v42 }
 0x2d2   : > { %v1324_v44 = vpop.f32.mrf.mxu0 }
 0x2d3   : > { %v1330_v45 = vadd.f32 %v1324_v44, %v1297_v43 }
 0x2d5   : > { %1334 = vst.msk [vmem:[#allocation3 + $0x18] sm:$0xff] %vm1053_vm11, %v1330_v45 }
 0x2f9   : > { %v1392_v47 = vpop.f32.mrf.mxu1 }
 0x2fa   : > { %v1393_v48 = vadd.f32 %v1392_v47, %v1346_v46 }
 0x2fc   : > { %v2027_v49 = vmul.f32 -1.442695, %v1393_v48 }
 0x2fe   : > { %2188 = vpow2.f32 %v2027_v49 }
 0x301   : > { %v1395_v51 = vpop.f32.mrf.mxu1 }
 0x302   : > { %v1396_v52 = vadd.f32 %v1395_v51, %v1351_v50 }
 0x304   : > { %v2189_v53 = vpop.eup %2188  ;;  %v2028_v54 = vmul.f32 -1.442695, %v1396_v52 }
 0x305   : > { %v1410_v55 = vadd.f32 1.0, %v2189_v53 }
 0x306   : > { %2190 = vpow2.f32 %v2028_v54 }
 0x307   : > { %2192 = vrcp.f32 %v1410_v55  ;;  %v1423_v0 = vand.u32 2147483648, %v1410_v55  ;;  %v1421_v2 = vand.u32 2147483647, %v1410_v55  ;;  %vm1417_vm7 = vweird.f32 %v1410_v55 }
 0x309   : > { %v1398_v56 = vpop.f32.mrf.mxu1  ;;  %v1424_v6 = vor.u32 1.1754944e-38, %v1423_v0  ;;  %vm1422_vm9 = vcmp.eq.f32.partialorder %v1421_v2, 8.507059e+37 }
 0x30a   : > { %v1399_v62 = vadd.f32 %v1398_v56, %v1356_v60 }
 0x30c   : > { %v2191_v57 = vpop.eup %2190 }
 0x30d   : > { %v2193_v58 = vpop.eup %2192  ;;  %v1411_v59 = vadd.f32 1.0, %v2191_v57 }
 0x30e   : > { %v1413_v61 = vmul.f32 %v2193_v58, %v1410_v55  ;;  %vm1418_vm6 = vweird.f32 %v2193_v58 }
 0x30f   : > { %2194 = vrcp.f32 %v1411_v59  ;;  %vm1419_vm8 = vmor %vm1417_vm7, %vm1418_vm6  ;;  %v1438_v17 = vand.u32 2147483648, %v1411_v59  ;;  %v1436_v21 = vand.u32 2147483647, %v1411_v59  ;;  %vm1432_vm12 = vweird.f32 %v1411_v59 }
 0x310   : > { %v1414_v63 = vsub.f32 1.0, %v1413_v61  ;;  %2196 = vtanh.f32 %v1399_v62 }
 0x311   : > { %v1401_v4 = vpop.f32.mrf.mxu1  ;;  %v1439_v25 = vor.u32 1.1754944e-38, %v1438_v17  ;;  %vm1437_vm14 = vcmp.eq.f32.partialorder %v1436_v21, 8.507059e+37 }
 0x312   : > { %v1415_v1 = vmul.f32 %v2193_v58, %v1414_v63  ;;  %v1402_v12 = vadd.f32 %v1401_v4, %v1361_v7 }
 0x314   : > { %v1416_v3 = vadd.f32 %v2193_v58, %v1415_v1  ;;  %2198 = vtanh.f32 %v1402_v12 }
 0x315   : > { %v2195_v5 = vpop.eup %2194 }
 0x316   : > { %v1428_v8 = vmul.f32 %v2195_v5, %v1411_v59  ;;  %v1420_v10 = vsel %vm1419_vm8, %v2193_v58, %v1416_v3  ;;  %v2197_v15 = vpop.eup %2196  ;;  %vm1433_vm10 = vweird.f32 %v2195_v5 }
 0x317   : > { %v1425_v11 = vsel %vm1422_vm9, %v1424_v6, %v1420_v10  ;;  %vm1434_vm13 = vmor %vm1432_vm12, %vm1433_vm10 }
 0x318   : > { %v1429_v13 = vsub.f32 1.0, %v1428_v8  ;;  %v1444_v14 = vsub.f32 1.0, %v1425_v11 }
 0x31a   : > { %v1430_v18 = vmul.f32 %v2195_v5, %v1429_v13  ;;  %v1446_v19 = vmul.f32 %v2197_v15, %v1444_v14  ;;  %v2199_v29 = vpop.eup %2198 }
 0x31c   : > { %1448 = vst [vmem:[%s2635_s27] sm:$0xff] %v1446_v19  ;;  %v1431_v24 = vadd.f32 %v2195_v5, %v1430_v18 }
 0x31e   : > { %v1435_v26 = vsel %vm1434_vm13, %v2195_v5, %v1431_v24 }
 0x31f   : > { %v1440_v27 = vsel %vm1437_vm14, %v1439_v25, %v1435_v26 }
 0x320   : > { %v1445_v9 = vsub.f32 1.0, %v1440_v27  ;;  %1453 = sbr.rel (%p2029_p9) target bundleno = 1292 (0x50c), region = 104 }
 0x322   : > { %v1447_v28 = vmul.f32 %v2199_v29, %v1445_v9 }
 0x324   : > { %1449 = vst [vmem:[%s2635_s27 + $0x8] sm:$0xff] %v1447_v28 }
 0x325   : > { %v1457_v30 = vld [vmem:[#allocation3 + $0x18] sm:$0xff]  ;;  %v2203_v31 = vld [vmem:[%s3259_s4] ss:$0 sm:$0xff]  ;;  %v1456_v32 = vld [vmem:[#allocation3 + $0x10] sm:$0xff]  ;;  %v2371_v34 = vmov 0   ;;  %s3262_s4 = sld [smem:[#allocation41_spill]] }
 0x326   : > { %v1455_v33 = vld [vmem:[#allocation3 + $0x8] sm:$0xff]  ;;  %2200 = vset.pattern.permute.xlu0 %v2371_v34  ;;  %2201 = vset.pattern.permute.xlu1 %v2371_v34  ;;  %v1465_v16 = vmul.f32 %v2203_v31, %v1457_v30  ;;  %v1464_v20 = vmul.f32 %v2203_v31, %v1456_v32  ;;  %v1473_v22 = vld [vmem:[%s3260_s0 + $0x18] sm:$0xff]  ;;  %v1454_v35 = vld [vmem:[#allocation3] sm:$0xff] }
 0x327   : > { %v1471_v23 = vld [vmem:[%s3260_s0 + $0x8] sm:$0xff]  ;;  %2202 = vset.pattern.permute.xlu2 %v2371_v34  ;;  %1491 = vperm.xlu0 %2200, %v1473_v22   ;;  %v1463_v36 = vmul.f32 %v2203_v31, %v1455_v33  ;;  %v1462_v37 = vmul.f32 %v2203_v31, %v1454_v35  ;;  %v1472_v39 = vld [vmem:[%s3260_s0 + $0x10] sm:$0xff]  ;;  %v1470_v40 = vld [vmem:[%s3260_s0] sm:$0xff] }
 0x328   : > { %1481 = vperm.xlu1 %2201, %v1471_v23   ;;  %2064 = vmatpush.msra.mxu3 %v1465_v16  ;;  %v1467_v38 = vld [vmem:[%s3261_s30 + $0x8] sm:$0xff]  ;;  %v1466_v41 = vld [vmem:[%s3261_s30] sm:$0xff]  ;;  %v1468_v42 = vld [vmem:[%s3261_s30 + $0x10] sm:$0xff] }
 0x329   : > { %1518 = vmatpush.msra.mxu0 %v1465_v16  ;;  %v1469_v45 = vld [vmem:[%s3261_s30 + $0x18] sm:$0xff]  ;;  %v1613_v46 = vld [vmem:[%s3264_s14 + $0x8] sm:$0xff]  ;;  %v1614_v47 = vld [vmem:[%s3264_s14 + $0x10] sm:$0xff] }
 0x32a   : > { %2065 = vmatpush.msra.mxu3 %v1464_v20  ;;  %v1612_v4 = vld [vmem:[%s3264_s14] sm:$0xff]  ;;  %v1615_v6 = vld [vmem:[%s3264_s14 + $0x18] sm:$0xff]  ;;  %v1609_v26 = vld [vmem:[%s3268_s20 + $0x8] sm:$0xff] }
 0x32b   : > { %1519 = vmatpush.msra.mxu0 %v1464_v20  ;;  %s3263_s16 = smov %s3262_s4  ;;  %v1544_v43 = vld [vmem:[%s3262_s4 + $0x8] sm:$0xff]  ;;  %s3265_s4 = sld [smem:[#allocation40_spill]]  ;;  %v1608_v25 = vld [vmem:[%s3267_s25] sm:$0xff]  ;;  %v1610_v27 = vld [vmem:[%s3268_s20 + $0x10] sm:$0xff] }
 0x32c   : > { %2066 = vmatpush.msra.mxu3 %v1463_v36  ;;  %v1543_v44 = vld [vmem:[%s3263_s16] sm:$0xff]  ;;  %v1546_v52 = vld [vmem:[%s3263_s16 + $0x18] sm:$0xff]  ;;  %v1545_v60 = vld [vmem:[%s3263_s16 + $0x10] sm:$0xff] }
 0x32d   : > { %1520 = vmatpush.msra.mxu0 %v1463_v36  ;;  %1564 = vperm.xlu2 %2202, %v1546_v52   ;;  %v1611_v9 = vld [vmem:[%s3268_s20 + $0x18] sm:$0xff] }
 0x32e   : > { %2067 = vmatpush.msra.mxu3 %v1462_v37 }
 0x32f   : > { %1521 = vmatpush.msra.mxu0 %v1462_v37  ;;  %2031 = vmatmul.msk.f32.vlgmr.msra.gmra.mxu3 %vm1228_vm4, %v1467_v38 }
 0x330   : > { %1486 = vperm.xlu0 %2200, %v1472_v39   ;;  %1476 = vperm.xlu1 %2201, %v1470_v40  }
 0x331   : > { %2030 = vmatmul.msk.f32.vlgmr.msra.gmra.mxu0 %vm1228_vm4, %v1466_v41  ;;  %s3266_s29 = smov %s3265_s4  ;;  %v1539_v2 = vld [vmem:[%s3265_s4] sm:$0xff] }
 0x332   : > { %v1540_v3 = vld [vmem:[%s3266_s29 + $0x8] sm:$0xff]  ;;  %v1541_v5 = vld [vmem:[%s3266_s29 + $0x10] sm:$0xff]  ;;  %v1542_v7 = vld [vmem:[%s3266_s29 + $0x18] sm:$0xff] }
 0x335   : > { %1559 = vperm.xlu2 %2202, %v1545_v60  }
 0x337   : > { %2032 = vmatmul.msk.f32.gmra.mxu3 %vm1228_vm4, %v1468_v42 }
 0x338   : > { %1554 = vperm.xlu0 %2200, %v1544_v43   ;;  %1549 = vperm.xlu1 %2201, %v1543_v44  }
 0x33d   : > { %1618 = vperm.xlu2 %2202, %v1612_v4  }
 0x33f   : > { %2033 = vmatmul.msk.f32.gmra.mxu3 %vm1228_vm4, %v1469_v45 }
 0x340   : > { %1623 = vperm.xlu0 %2200, %v1613_v46   ;;  %1628 = vperm.xlu1 %2201, %v1614_v47  }
 0x345   : > { %1633 = vperm.xlu2 %2202, %v1615_v6  }
 0x387   : > { %v1565_v10 = vpop.permute.xlu2 %1564 }
 0x38f   : > { %v1560_v14 = vpop.permute.xlu2 %1559 }
 0x397   : > { %v1619_v29 = vpop.permute.xlu2 %1618 }
 0x399   : > { %v1492_v49 = vpop.permute.xlu0 %1491 }
 0x39a   : > { %v1482_v51 = vpop.permute.xlu1 %1481 }
 0x39f   : > { %v1634_v47 = vpop.permute.xlu2 %1633 }
 0x3a2   : > { %v1487_v53 = vpop.permute.xlu0 %1486  ;;  %v1477_v61 = vpop.permute.xlu1 %1476 }
 0x3aa   : > { %v1555_v17 = vpop.permute.xlu0 %1554  ;;  %v1550_v21 = vpop.permute.xlu1 %1549 }
 0x3ae   : > { %v1523_v57 = vpop.f32.mrf.mxu0 }
 0x3af   : > { %v1524_v63 = vadd.f32 %v1523_v57, %v1477_v61 }
 0x3b1   : > { %v1535_v1 = vmax.f32 %v1524_v63, 0.0 }
 0x3b2   : > { %v1526_v48 = vpop.f32.mrf.mxu3  ;;  %v1624_v32 = vpop.permute.xlu0 %1623 }
 0x3b3   : > { %v1527_v58 = vadd.f32 %v1526_v48, %v1482_v51  ;;  %v1629_v38 = vpop.permute.xlu1 %1628 }
 0x3b5   : > { %v1536_v0 = vmax.f32 %v1527_v58, 0.0 }
 0x3ba   : > { %v1529_v50 = vpop.f32.mrf.mxu3 }
 0x3bb   : > { %v1530_v55 = vadd.f32 %v1529_v50, %v1487_v53 }
 0x3bd   : > { %v1537_v62 = vmax.f32 %v1530_v55, 0.0 }
 0x3c2   : > { %v1532_v54 = vpop.f32.mrf.mxu3 }
 0x3c3   : > { %v1533_v56 = vadd.f32 %v1532_v54, %v1492_v49 }
 0x3c5   : > { %v1538_v59 = vmax.f32 %v1533_v56, 0.0 }
 0x3c7   : > { %1591 = vmatpush.msrb.mxu0 %v1538_v59  ;;  %2068 = vmatpush.msra.mxu1 %v1538_v59 }
 0x3c9   : > { %1592 = vmatpush.msrb.mxu0 %v1537_v62  ;;  %2069 = vmatpush.msra.mxu1 %v1537_v62 }
 0x3cb   : > { %1593 = vmatpush.msrb.mxu0 %v1536_v0  ;;  %2070 = vmatpush.msra.mxu1 %v1536_v0 }
 0x3cd   : > { %1594 = vmatpush.msrb.mxu0 %v1535_v1  ;;  %2071 = vmatpush.msra.mxu1 %v1535_v1 }
 0x3ce   : > { %2034 = vmatmul.msk.f32.vlgmr.msrb.gmra.mxu0 %vm1228_vm4, %v1539_v2  ;;  %2035 = vmatmul.msk.f32.vlgmr.msra.gmra.mxu1 %vm1228_vm4, %v1540_v3 }
 0x3d6   : > { %2036 = vmatmul.msk.f32.gmra.mxu1 %vm1228_vm4, %v1541_v5 }
 0x3de   : > { %2037 = vmatmul.msk.f32.gmra.mxu1 %vm1228_vm4, %v1542_v7 }
 0x44b   : > { %v1599_v8 = vpop.f32.mrf.mxu1  ;;  %v1596_v18 = vpop.f32.mrf.mxu0 }
 0x44c   : > { %v1600_v19 = vadd.f32 %v1599_v8, %v1555_v17  ;;  %v1597_v24 = vadd.f32 %v1596_v18, %v1550_v21 }
 0x453   : > { %v1602_v11 = vpop.f32.mrf.mxu1 }
 0x454   : > { %v1603_v15 = vadd.f32 %v1602_v11, %v1560_v14 }
 0x45b   : > { %v1605_v12 = vpop.f32.mrf.mxu1 }
 0x45c   : > { %v1606_v13 = vadd.f32 %v1605_v12, %v1565_v10 }
 0x45e   : > { %1660 = vmatpush.msra.mxu0 %v1606_v13  ;;  %2072 = vmatpush.msra.mxu2 %v1606_v13 }
 0x460   : > { %1661 = vmatpush.msra.mxu0 %v1603_v15  ;;  %2073 = vmatpush.msra.mxu2 %v1603_v15 }
 0x462   : > { %1662 = vmatpush.msra.mxu0 %v1600_v19  ;;  %2074 = vmatpush.msra.mxu2 %v1600_v19 }
 0x464   : > { %1663 = vmatpush.msra.mxu0 %v1597_v24  ;;  %2075 = vmatpush.msra.mxu2 %v1597_v24 }
 0x465   : > { %2038 = vmatmul.msk.f32.vlgmr.msra.gmra.mxu0 %vm1228_vm4, %v1608_v25  ;;  %2039 = vmatmul.msk.f32.vlgmr.msra.gmra.mxu2 %vm1228_vm4, %v1609_v26 }
 0x46d   : > { %2040 = vmatmul.msk.f32.gmra.mxu2 %vm1228_vm4, %v1610_v27 }
 0x475   : > { %2041 = vmatmul.msk.f32.gmra.mxu2 %vm1228_vm4, %v1611_v9 }
 0x4e2   : > { %v1665_v28 = vpop.f32.mrf.mxu0 }
 0x4e3   : > { %v1666_v30 = vadd.f32 %v1665_v28, %v1619_v29 }
 0x4e5   : > { %v2042_v31 = vmul.f32 -1.442695, %v1666_v30 }
 0x4e7   : > { %2204 = vpow2.f32 %v2042_v31 }
 0x4e8   : > { %v1668_v33 = vpop.f32.mrf.mxu2 }
 0x4e9   : > { %v1669_v34 = vadd.f32 %v1668_v33, %v1624_v32 }
 0x4eb   : > { %v2043_v16 = vmul.f32 -1.442695, %v1669_v34 }
 0x4ed   : > { %v2205_v20 = vpop.eup %2204  ;;  %2206 = vpow2.f32 %v2043_v16 }
 0x4ee   : > { %v1683_v22 = vadd.f32 1.0, %v2205_v20 }
 0x4f0   : > { %2208 = vrcp.f32 %v1683_v22  ;;  %v1671_v23 = vpop.f32.mrf.mxu2  ;;  %v1696_v42 = vand.u32 2147483648, %v1683_v22  ;;  %v1694_v44 = vand.u32 2147483647, %v1683_v22  ;;  %vm1690_vm0 = vweird.f32 %v1683_v22 }
 0x4f1   : > { %v1672_v40 = vadd.f32 %v1671_v23, %v1629_v38 }
 0x4f2   : > { %v1697_v50 = vor.u32 1.1754944e-38, %v1696_v42  ;;  %vm1695_vm2 = vcmp.eq.f32.partialorder %v1694_v44, 8.507059e+37 }
 0x4f3   : > { %v2207_v35 = vpop.eup %2206 }
 0x4f4   : > { %v1684_v36 = vadd.f32 1.0, %v2207_v35 }
 0x4f6   : > { %v2209_v37 = vpop.eup %2208  ;;  %2210 = vrcp.f32 %v1684_v36  ;;  %v1711_v55 = vand.u32 2147483648, %v1684_v36  ;;  %v1709_v58 = vand.u32 2147483647, %v1684_v36  ;;  %vm1705_vm4 = vweird.f32 %v1684_v36 }
 0x4f7   : > { %v1686_v39 = vmul.f32 %v2209_v37, %v1683_v22  ;;  %vm1691_vm15 = vweird.f32 %v2209_v37  ;;  %2212 = vtanh.f32 %v1672_v40 }
 0x4f8   : > { %v1674_v45 = vpop.f32.mrf.mxu2  ;;  %vm1692_vm1 = vmor %vm1690_vm0, %vm1691_vm15  ;;  %v1712_v62 = vor.u32 1.1754944e-38, %v1711_v55  ;;  %vm1710_vm6 = vcmp.eq.f32.partialorder %v1709_v58, 8.507059e+37 }
 0x4f9   : > { %v1687_v41 = vsub.f32 1.0, %v1686_v39  ;;  %v1675_v51 = vadd.f32 %v1674_v45, %v1634_v47 }
 0x4fb   : > { %v1688_v43 = vmul.f32 %v2209_v37, %v1687_v41  ;;  %2214 = vtanh.f32 %v1675_v51 }
 0x4fc   : > { %v2211_v46 = vpop.eup %2210 }
 0x4fd   : > { %v1701_v48 = vmul.f32 %v2211_v46, %v1684_v36  ;;  %v1689_v49 = vadd.f32 %v2209_v37, %v1688_v43  ;;  %vm1706_vm3 = vweird.f32 %v2211_v46  ;;  %v2213_v59 = vpop.eup %2212 }
 0x4fe   : > { %vm1707_vm5 = vmor %vm1705_vm4, %vm1706_vm3 }
 0x4ff   : > { %v1702_v52 = vsub.f32 1.0, %v1701_v48  ;;  %v1693_v53 = vsel %vm1692_vm1, %v2209_v37, %v1689_v49 }
 0x500   : > { %v1698_v54 = vsel %vm1695_vm2, %v1697_v50, %v1693_v53 }
 0x501   : > { %v1703_v56 = vmul.f32 %v2211_v46, %v1702_v52  ;;  %v1717_v57 = vsub.f32 1.0, %v1698_v54  ;;  %v2215_v2 = vpop.eup %2214 }
 0x503   : > { %v1719_v60 = vmul.f32 %v2213_v59, %v1717_v57  ;;  %v1704_v61 = vadd.f32 %v2211_v46, %v1703_v56 }
 0x505   : > { %1721 = vst.msk [vmem:[%s2633_s23] sm:$0xff] %vm1053_vm11, %v1719_v60  ;;  %v1708_v63 = vsel %vm1707_vm5, %v2211_v46, %v1704_v61 }
 0x506   : > { %v1713_v0 = vsel %vm1710_vm6, %v1712_v62, %v1708_v63 }
 0x507   : > { %v1718_v1 = vsub.f32 1.0, %v1713_v0 }
 0x509   : > { %v1720_v3 = vmul.f32 %v2215_v2, %v1718_v1 }
 0x50b   : > { %1722 = vst.msk [vmem:[%s2633_s23 + $0x8] sm:$0xff] %vm1053_vm11, %v1720_v3 }
 0x50c PF: > { %s3269_s15 = sld [smem:[#allocation14_spill]]  ;;  %s2052_s13 = sshll.u32 %s2354_s26, 4 }
 0x50d   : > { %s3271_s22 = sld [smem:[#allocation46_spill]]  ;;  %s1741_s4 = sshll.u32 %s2633_s23, 4  ;;  %s1742_s4 = int_to_ptr.vmem [resolvable:$true] %s1741_s4 }
 0x512   : > { %s3273_s24 = sand.u32 1, %s3269_s15  }
 0x513   : > { %s3272_s11 = smov %s3271_s22  ;;  %s1740_s25 = scalar_lea.hbm %s3271_s22, %s2052_s13 }
 0x514   : > { %s1743_s2 = sshll.u32 %s1740_s25, 4  ;;  %s1724_s28 = scalar_lea.sflag [#allocation5], %s3273_s24  ;;  %s1744_s2 = int_to_ptr.hbm [resolvable:$true] %s1743_s2 }
 0x515   : > { %s2230_s12 = sshra.s32 %s1744_s2, 4  ;;  %s2236_s7 = scalar_lea.hbm %s3272_s11, 32  ;;  %s2231_s12 = int_to_ptr.hbm [resolvable:$true] %s2230_s12 }
 0x516   : > { %s2232_s0 = scalar_lea.hbm %s2231_s12, 16  ;;  %p2237_p1 = scmp.lt.s32.totalorder %s2231_s12, %s3272_s11 }
 0x517   : > { %p2233_p10 = scmp.ne.s32.totalorder %s2231_s12, %s2232_s0  ;;  %p2238_p4 = scmp.lt.s32.totalorder %s2236_s7, %s2232_s0 }
 0x519   : > { %p2234_p11 = pnand %p2233_p10, %p2551_p3  ;;  %p2239_p2 = por %p2238_p4, %p2237_p1 }
 0x51b   : > { %p2235_p0 = pneg %p2234_p11 }
 0x51d   : > { %p2240_p5 = pnand %p2239_p2, %p2235_p0 }
 0x51f   : > { %2243 = shalt.err (!%p2240_p5)
}
 0x520   : > { %s2372_s23 = smov 128   ;;  %s3274_s15 = sld [smem:[#allocation11_spill]] }
 0x521   : > { %s2373_s18 = smov 8   ;;  %s2048_s5 = sshll.u32 %s2354_s26, 2 }
 0x522   : > { %2076 = dma.vmem_to_hbm [thread:$0]  (%p2551_p3), %s1742_s4, 256, %s1744_s2, %s1724_s28, %s2372_s23, %s2372_s23, %s2373_s18  }
 0x523   : > { %s1759_s6 = sshll.u32 %s2635_s27, 4  ;;  %s1756_s8 = sadd.s32 %s2350_s3, %s2048_s5  ;;  %s1760_s6 = int_to_ptr.vmem [resolvable:$true] %s1759_s6 }
 0x524   : > { %s2049_s22 = sshll.u32 %s1756_s8, 3  ;;  %s3276_s25 = sld [smem:[#allocation47_spill]] }
 0x526   : > { %s3278_s9 = sand.u32 1, %s3274_s15  }
 0x527   : > { %s1729_s10 = scalar_lea.sflag [#allocation7], %s3278_s9 }
 0x52a   : > { %s3277_s12 = smov %s3276_s25  ;;  %s1758_s24 = scalar_lea.hbm %s3276_s25, %s2049_s22 }
 0x52b   : > { %s1761_s1 = sshll.u32 %s1758_s24, 4  ;;  %s2264_s3 = scalar_lea.hbm %s3277_s12, 64  ;;  %s1762_s1 = int_to_ptr.hbm [resolvable:$true] %s1761_s1 }
 0x52c   : > { %s2258_s11 = sshra.s32 %s1762_s1, 4  ;;  %s2259_s11 = int_to_ptr.hbm [resolvable:$true] %s2258_s11 }
 0x52d   : > { %s2260_s14 = scalar_lea.hbm %s2259_s11, 16  ;;  %p2265_p9 = scmp.lt.s32.totalorder %s2259_s11, %s3277_s12 }
 0x52e   : > { %p2261_p6 = scmp.ne.s32.totalorder %s2259_s11, %s2260_s14  ;;  %p2266_p10 = scmp.lt.s32.totalorder %s2264_s3, %s2260_s14 }
 0x530   : > { %p2262_p8 = pnand %p2261_p6, %p2580_p12  ;;  %p2267_p11 = por %p2266_p10, %p2265_p9 }
 0x532   : > { %p2263_p3 = pneg %p2262_p8 }
 0x534   : > { %p2268_p0 = pnand %p2267_p11, %p2263_p3 }
 0x536   : > { %2271 = shalt.err (!%p2268_p0)
}
 0x537   : > { %s2374_s9 = smov 256  }
 0x538   : > { %2077 = dma.vmem_to_hbm [thread:$0]  (%p2580_p12), %s1760_s6, 256, %s1762_s1, %s1729_s10, %s2372_s23, %s2374_s9, %s2373_s18  }
 0x539 PF: > { %s3279_s2 = sld [smem:[#allocation18_spill]] }
 0x53a   : > { %s3280_s28 = sld [smem:[#allocation13_spill]] }
 0x53f   : > { %p2087_p1 = scmp.ge.s32.totalorder %s3279_s2, 2 }
 0x540   : > { %s1776_s5 = sand.u32 1, %s3280_s28  }
 0x541   : > { %p2081_p4 = pnand %p2087_p1, %p2568_p7  ;;  %s1777_s8 = scalar_lea.sflag [#allocation5], %s1776_s5 }
 0x543   : > { %p2082_p2 = pneg %p2081_p4 }
 0x545   : > { %2317 = dma.done.wait (%p2082_p2), %s1777_s8, 256  }
 0x546   : > { %2319 = vsyncadd (%p2082_p2), %s1777_s8, 4294967040  ;;  %s3282_s14 = sld [smem:[#allocation10_spill]]  ;;  %p2084_p5 = pnand %p2087_p1, %p2592_p13 }
 0x548   : > { %p2085_p6 = pneg %p2084_p5 }
 0x54c   : > { %s1786_s22 = sand.u32 1, %s3282_s14  }
 0x54d   : > { %s1787_s13 = scalar_lea.sflag [#allocation7], %s1786_s22 }
 0x54e   : > { %2321 = dma.done.wait (%p2085_p6), %s1787_s13, 256  }
 0x54f   : > { %2323 = vsyncadd (%p2085_p6), %s1787_s13, 4294967040  ;;  %s37_s4 = sadd.s32 1, %s3279_s2   ;;  %s3284_s1 = sld [smem:[#allocation11_spill]] }
 0x550   : > { %p34_p12 = scmp.ge.s32.totalorder %s37_s4, 6   ;;  %s3285_s22 = sld [smem:[#allocation12_spill]] }
 0x551   : > { %s3286_s23 = sld [smem:[#allocation25_spill]] }
 0x552   : > { %s3287_s24 = sld [smem:[#allocation14_spill]] }
 0x553   : > { %s3288_s2 = sld [smem:[#allocation15_spill]] }
 0x554   : > { %s3289_s25 = sld [smem:[#allocation24_spill]]  ;;  %36 = sbr.rel (!%p34_p12) target bundleno = 31 (0x1f), region = 168 }
 0x555   : > { %s3290_s3 = sld [smem:[#allocation16_spill]] }
 0x556   : > { %s3291_s26 = sld [smem:[#allocation17_spill]] }
 0x557   : > { %s3292_s27 = sld [smem:[#allocation19_spill]] }
 0x558   : > { %s3293_s28 = sld [smem:[#allocation21_spill]] }
 0x559   :  { %1793 = vsyncpa [#allocation5], 1 }
 0x55a   :  { %1795 = vsyncpa [#allocation5 + $0x1], 1 }
 0x55b   :  { %1796 = vsyncpa [#allocation7], 1 }
 0x55c   :  { %1798 = vsyncpa [#allocation7 + $0x1], 1 }

</bundles_post_ra>
